<compile_context>
chip_gen: v6e
topology: v6e:2x2x1
jax: 0.10.0
libtpu: 0.0.40
codegen_flags: <defaults>
</compile_context>

<pallas_src>
import functools
import math

import jax
import jax.numpy as jnp
from jax.experimental import pallas as pl
from jax.experimental.pallas import tpu as pltpu

LN_EPS = 1e-5  # PyTorch nn.LayerNorm default


def _round_up(x, m):
    return (x + m - 1) // m * m


# ----------------------------------------------------------------------------
# Fused kernel: time-embedding + cond activation + all residual blocks.
# ----------------------------------------------------------------------------
def _fused_mlp_kernel(t_ref, c_ref, x_ref, pw_ref, wt0_ref, wsc_ref, bt_ref,
                      wgg_ref, w1_ref, b1_ref, w2_ref, b2_ref, o_ref,
                      *, depth, din_real, din_pad, mm_dtype):
    f32 = jnp.float32

    # ---- time embedding + cond activation (per row tile) -------------------
    t = t_ref[...]                                       # (tm, 1)
    freqs = t * pw_ref[...] * (2.0 * math.pi)            # (tm, half_p)
    # merged sin/cos matmul: one (tm, 2*half_p) @ (2*half_p, Dc_p) push
    sc = jnp.concatenate([jnp.sin(freqs), jnp.cos(freqs)], axis=-1)
    emb = (t * wt0_ref[...]                              # column 0 of the Linear
           + jnp.dot(sc, wsc_ref[...], preferred_element_type=f32)
           + bt_ref[...])                                # (tm, Dc_p)
    z = emb + c_ref[...]
    cond = z * jax.nn.sigmoid(z)                         # SiLU, f32
    cond_mm = cond.astype(mm_dtype)

    # ---- residual blocks, all kept resident in VMEM/vregs -------------------
    x = x_ref[...].astype(f32)                           # (tm, Din_p)
    inv_d = 1.0 / float(din_real)
    # depth is small -> unrolled Python loop (weights indexed statically).
    for d in range(depth):
        # one-pass LayerNorm stats; zero-padded lanes contribute 0 to sums.
        s1 = jnp.sum(x, axis=-1, keepdims=True)
        s2 = jnp.sum(x * x, axis=-1, keepdims=True)
        mean = s1 * inv_d
        var = s2 * inv_d - mean * mean
        normed = (x - mean) * jax.lax.rsqrt(var + LN_EPS)

        # merged gamma matmul: [to_gamma | block_out_gamma] in one weight.
        gammas = jnp.dot(cond_mm, wgg_ref[d], preferred_element_type=f32)
        g1 = gammas[:, :din_pad]
        g2 = gammas[:, din_pad:]

        adaln = normed * (g1 + 1.0)
        h = jnp.dot(adaln.astype(mm_dtype), w1_ref[d],
                    preferred_element_type=f32) + b1_ref[d]
        h = h * jax.nn.sigmoid(h)                        # SiLU
        block_out = jnp.dot(h.astype(mm_dtype), w2_ref[d],
                            preferred_element_type=f32) + b2_ref[d]
        x = block_out * (g2 + 1.0) + x                   # residual add

    o_ref[...] = x.astype(o_ref.dtype)


def mlp_forward_pallas(noised, times, cond, params, *, tm=256,
                       mm_dtype=jnp.float32):
    B, N, Din = noised.shape
    Dc = cond.shape[-1]
    half = Dc // 2
    depth = len(params["layers"])
    W = params["layers"][0]["w1"].shape[0]

    # lane-dense feature padding (padded weight rows/cols are zero)
    Din_p = _round_up(Din, 128)
    Dc_p = _round_up(Dc, 128)
    W_p = _round_up(W, 128)
    half_p = _round_up(half, 64)          # so 2*half_p is a multiple of 128

    R = B * N
    tm_eff = min(tm, _round_up(R, 8))     # keep sublane-aligned row tile
    R_p = _round_up(R, tm_eff)

    f32 = jnp.float32
    # row-tiled inputs (zero padded rows / feature lanes)
    t2 = jnp.zeros((R_p, 1), f32).at[:R, :].set(times.reshape(R, 1).astype(f32))
    c2 = jnp.zeros((R_p, Dc_p), f32).at[:R, :Dc].set(cond.reshape(R, Dc).astype(f32))
    x2 = jnp.zeros((R_p, Din_p), f32).at[:R, :Din].set(noised.reshape(R, Din).astype(f32))

    # time-embedding weights: split the (Dc, Dc+1) Linear into [t | sin | cos]
    Wt = params["time_w"]                 # (Dc, Dc+1), PyTorch (out, in)
    pw_p = jnp.zeros((1, half_p), f32).at[0, :half].set(params["posemb_w"])
    wt0_p = jnp.zeros((1, Dc_p), f32).at[0, :Dc].set(Wt[:, 0])
    bt_p = jnp.zeros((1, Dc_p), f32).at[0, :Dc].set(params["time_b"])
    wsc_p = jnp.zeros((2 * half_p, Dc_p), f32)
    wsc_p = wsc_p.at[:half, :Dc].set(Wt[:, 1:1 + half].T)            # sin rows
    wsc_p = wsc_p.at[half_p:half_p + half, :Dc].set(Wt[:, 1 + half:].T)  # cos rows

    # stacked per-layer weights, (in, out) orientation, zero padded
    wgg = jnp.zeros((depth, Dc_p, 2 * Din_p), f32)   # [to_gamma | block_out_gamma]
    w1s = jnp.zeros((depth, Din_p, W_p), f32)
    b1s = jnp.zeros((depth, 1, W_p), f32)
    w2s = jnp.zeros((depth, W_p, Din_p), f32)
    b2s = jnp.zeros((depth, 1, Din_p), f32)
    for d, layer in enumerate(params["layers"]):
        wgg = wgg.at[d, :Dc, :Din].set(layer["wg"].T)
        wgg = wgg.at[d, :Dc, Din_p:Din_p + Din].set(layer["wog"].T)
        w1s = w1s.at[d, :Din, :W].set(layer["w1"].T)
        b1s = b1s.at[d, 0, :W].set(layer["b1"])
        w2s = w2s.at[d, :W, :Din].set(layer["w2"].T)
        b2s = b2s.at[d, 0, :Din].set(layer["b2"])
    wgg = wgg.astype(mm_dtype)
    w1s = w1s.astype(mm_dtype)
    w2s = w2s.astype(mm_dtype)

    kernel = functools.partial(
        _fused_mlp_kernel, depth=depth, din_real=Din, din_pad=Din_p,
        mm_dtype=mm_dtype)

    const3 = lambda i: (0, 0, 0)
    const2 = lambda i: (0, 0)
    row2 = lambda i: (i, 0)

    out = pl.pallas_call(
        kernel,
        out_shape=jax.ShapeDtypeStruct((R_p, Din_p), f32),
        grid=(R_p // tm_eff,),
        in_specs=[
            pl.BlockSpec((tm_eff, 1), row2),                  # times
            pl.BlockSpec((tm_eff, Dc_p), row2),               # cond
            pl.BlockSpec((tm_eff, Din_p), row2),              # noised / residual
            pl.BlockSpec((1, half_p), const2),                # posemb weights
            pl.BlockSpec((1, Dc_p), const2),                  # time Linear col 0
            pl.BlockSpec((2 * half_p, Dc_p), const2),         # merged sin/cos W
            pl.BlockSpec((1, Dc_p), const2),                  # time Linear bias
            # constant-index stacked layer weights: DMA'd once, stay resident
            pl.BlockSpec((depth, Dc_p, 2 * Din_p), const3),   # merged gammas W
            pl.BlockSpec((depth, Din_p, W_p), const3),        # W1
            pl.BlockSpec((depth, 1, W_p), const3),            # b1
            pl.BlockSpec((depth, W_p, Din_p), const3),        # W2
            pl.BlockSpec((depth, 1, Din_p), const3),          # b2
        ],
        out_specs=pl.BlockSpec((tm_eff, Din_p), row2),
        compiler_params=pltpu.CompilerParams(
            dimension_semantics=("parallel",),
            vmem_limit_bytes=32 * 1024 * 1024),
    )(t2, c2, x2, pw_p, wt0_p, wsc_p, bt_p, wgg, w1s, b1s, w2s, b2s)

    return out[:R, :Din].reshape(B, N, Din)


# ----------------------------------------------------------------------------
# Pure-JAX reference (mirrors the PyTorch forward) for a correctness check.
# ----------------------------------------------------------------------------
def mlp_forward_ref(noised, times, cond, params):
    pw = params["posemb_w"]
    Wt, bt = params["time_w"], params["time_b"]
    freqs = times * pw * (2.0 * math.pi)
    fouriered = jnp.concatenate([jnp.sin(freqs), jnp.cos(freqs)], axis=-1)
    fouriered = jnp.concatenate([times, fouriered], axis=-1)
    time_emb = fouriered @ Wt.T + bt
    c = jax.nn.silu(time_emb + cond)
    x = noised
    for layer in params["layers"]:
        residual = x
        mean = x.mean(-1, keepdims=True)
        var = ((x - mean) ** 2).mean(-1, keepdims=True)
        normed = (x - mean) / jnp.sqrt(var + LN_EPS)
        x = normed * (c @ layer["wg"].T + 1.0)
        h = jax.nn.silu(x @ layer["w1"].T + layer["b1"])
        out = h @ layer["w2"].T + layer["b2"]
        x = out * (c @ layer["wog"].T + 1.0) + residual
    return x


def make_params(key, dim_cond, dim_input, width, depth):
    keys = jax.random.split(key, 3 + 4 * depth)
    half = dim_cond // 2
    params = {
        "posemb_w": jax.random.normal(keys[0], (half,), jnp.float32),
        "time_w": jax.random.normal(keys[1], (dim_cond, dim_cond + 1), jnp.float32) * 0.1,
        "time_b": jax.random.normal(keys[2], (dim_cond,), jnp.float32) * 0.1,
        "layers": [],
    }
    for d in range(depth):
        k = keys[3 + 4 * d: 3 + 4 * (d + 1)]
        params["layers"].append({
            # nn.init.zeros_ per the module __init__
            "wg": jnp.zeros((dim_input, dim_cond), jnp.float32),
            "w1": jax.random.normal(k[0], (width, dim_input), jnp.float32) * 0.1,
            "b1": jax.random.normal(k[1], (width,), jnp.float32) * 0.1,
            "w2": jax.random.normal(k[2], (dim_input, width), jnp.float32) * 0.1,
            "b2": jax.random.normal(k[3], (dim_input,), jnp.float32) * 0.1,
            # nn.init.zeros_ per the module __init__
            "wog": jnp.zeros((dim_input, dim_cond), jnp.float32),
        })
    return params


if __name__ == "__main__":
    B, N = 2, 8
    DIM_COND, DIM_INPUT, WIDTH, DEPTH = 16, 32, 64, 3

    key = jax.random.PRNGKey(0)
    k_n, k_t, k_c, k_p = jax.random.split(key, 4)
    noised = jax.random.normal(k_n, (B, N, DIM_INPUT), jnp.float32)
    times = jax.random.uniform(k_t, (B, N, 1), jnp.float32)
    cond = jax.random.normal(k_c, (B, N, DIM_COND), jnp.float32)
    params = make_params(k_p, DIM_COND, DIM_INPUT, WIDTH, DEPTH)

    ref = jax.block_until_ready(mlp_forward_ref(noised, times, cond, params))

    # f32 matmuls: bit-faithful to the PyTorch module.
    out = jax.block_until_ready(mlp_forward_pallas(noised, times, cond, params))
    assert out.shape == (B, N, DIM_INPUT)
    assert jnp.allclose(out, ref, atol=1e-3, rtol=1e-3), (
        f"f32 max abs err {jnp.max(jnp.abs(out - ref))}")

    # bf16 matmul operands (v6e/v7x fast path); element-wise math stays f32.
    out_bf16 = jax.block_until_ready(
        mlp_forward_pallas(noised, times, cond, params, mm_dtype=jnp.bfloat16))
    assert jnp.allclose(out_bf16, ref, atol=5e-2, rtol=5e-2), (
        f"bf16 max abs err {jnp.max(jnp.abs(out_bf16 - ref))}")

    print("KERNEL_OK")
</pallas_src>

<mosaic_0001>
module attributes {stable_mosaic.version = 11 : i64} {
  func.func @_fused_mlp_kernel(%arg0: i32, %arg1: memref<16x1xf32, #tpu.memory_space<vmem>>, %arg2: memref<16x128xf32, #tpu.memory_space<vmem>>, %arg3: memref<16x128xf32, #tpu.memory_space<vmem>>, %arg4: memref<1x64xf32, #tpu.memory_space<vmem>>, %arg5: memref<1x128xf32, #tpu.memory_space<vmem>>, %arg6: memref<128x128xf32, #tpu.memory_space<vmem>>, %arg7: memref<1x128xf32, #tpu.memory_space<vmem>>, %arg8: memref<3x128x256xf32, #tpu.memory_space<vmem>>, %arg9: memref<3x128x128xf32, #tpu.memory_space<vmem>>, %arg10: memref<3x1x128xf32, #tpu.memory_space<vmem>>, %arg11: memref<3x128x128xf32, #tpu.memory_space<vmem>>, %arg12: memref<3x1x128xf32, #tpu.memory_space<vmem>>, %arg13: memref<16x128xf32, #tpu.memory_space<vmem>>) attributes {dimension_semantics = [#tpu.dimension_semantics<parallel>], iteration_bounds = array<i64: 1>, scalar_prefetch = 0 : i64, scratch_operands = 0 : i64, tpu.core_type = #tpu.core_type<tc>, window_params = [{transform_indices = @transform_0, window_bounds = array<i64: 16, 1>}, {transform_indices = @transform_1, window_bounds = array<i64: 16, 128>}, {transform_indices = @transform_2, window_bounds = array<i64: 16, 128>}, {pipeline_mode = #tpu.pipeline_mode<synchronous>, transform_indices = @transform_3, window_bounds = array<i64: 1, 64>}, {pipeline_mode = #tpu.pipeline_mode<synchronous>, transform_indices = @transform_4, window_bounds = array<i64: 1, 128>}, {pipeline_mode = #tpu.pipeline_mode<synchronous>, transform_indices = @transform_5, window_bounds = array<i64: 128, 128>}, {pipeline_mode = #tpu.pipeline_mode<synchronous>, transform_indices = @transform_6, window_bounds = array<i64: 1, 128>}, {pipeline_mode = #tpu.pipeline_mode<synchronous>, transform_indices = @transform_7, window_bounds = array<i64: 3, 128, 256>}, {pipeline_mode = #tpu.pipeline_mode<synchronous>, transform_indices = @transform_8, window_bounds = array<i64: 3, 128, 128>}, {pipeline_mode = #tpu.pipeline_mode<synchronous>, transform_indices = @transform_9, window_bounds = array<i64: 3, 1, 128>}, {pipeline_mode = #tpu.pipeline_mode<synchronous>, transform_indices = @transform_10, window_bounds = array<i64: 3, 128, 128>}, {pipeline_mode = #tpu.pipeline_mode<synchronous>, transform_indices = @transform_11, window_bounds = array<i64: 3, 1, 128>}, {transform_indices = @transform_12, window_bounds = array<i64: 16, 128>}]} {
    %c0 = arith.constant 0 : index
    %c0_0 = arith.constant 0 : index
    %0 = vector.load %arg1[%c0, %c0_0] : memref<16x1xf32, #tpu.memory_space<vmem>>, vector<16x1xf32>
    %c0_1 = arith.constant 0 : index
    %c0_2 = arith.constant 0 : index
    %1 = vector.load %arg4[%c0_1, %c0_2] : memref<1x64xf32, #tpu.memory_space<vmem>>, vector<1x64xf32>
    %2 = vector.broadcast %0 : vector<16x1xf32> to vector<16x64xf32>
    %3 = vector.broadcast %1 : vector<1x64xf32> to vector<16x64xf32>
    %4 = arith.mulf %2, %3 : vector<16x64xf32>
    %cst = arith.constant 6.28318548 : f32
    %5 = vector.broadcast %cst : f32 to vector<16x64xf32>
    %6 = arith.mulf %4, %5 : vector<16x64xf32>
    %7 = math.sin %6 : vector<16x64xf32>
    %8 = math.cos %6 : vector<16x64xf32>
    %9 = tpu.concatenate %7, %8 in 1 : vector<16x64xf32>, vector<16x64xf32> -> vector<16x128xf32>
    %c0_3 = arith.constant 0 : index
    %c0_4 = arith.constant 0 : index
    %10 = vector.load %arg5[%c0_3, %c0_4] : memref<1x128xf32, #tpu.memory_space<vmem>>, vector<1x128xf32>
    %11 = vector.broadcast %0 : vector<16x1xf32> to vector<16x128xf32>
    %12 = vector.broadcast %10 : vector<1x128xf32> to vector<16x128xf32>
    %13 = arith.mulf %11, %12 : vector<16x128xf32>
    %c0_5 = arith.constant 0 : index
    %c0_6 = arith.constant 0 : index
    %14 = vector.load %arg6[%c0_5, %c0_6] : memref<128x128xf32, #tpu.memory_space<vmem>>, vector<128x128xf32>
    %cst_7 = arith.constant dense<0.000000e+00> : vector<16x128xf32>
    %15 = tpu.matmul %9, %14, %cst_7 {dimension_numbers = #tpu.dot_dimension_numbers<[1], [0], [0], [1], [0, 0, 1, 1], [], []>} : vector<16x128xf32>, vector<128x128xf32>, vector<16x128xf32> -> vector<16x128xf32>
    %16 = arith.addf %13, %15 : vector<16x128xf32>
    %c0_8 = arith.constant 0 : index
    %c0_9 = arith.constant 0 : index
    %17 = vector.load %arg7[%c0_8, %c0_9] : memref<1x128xf32, #tpu.memory_space<vmem>>, vector<1x128xf32>
    %18 = vector.broadcast %17 : vector<1x128xf32> to vector<16x128xf32>
    %19 = arith.addf %16, %18 : vector<16x128xf32>
    %c0_10 = arith.constant 0 : index
    %c0_11 = arith.constant 0 : index
    %20 = vector.load %arg2[%c0_10, %c0_11] : memref<16x128xf32, #tpu.memory_space<vmem>>, vector<16x128xf32>
    %21 = arith.addf %19, %20 : vector<16x128xf32>
    %22 = arith.negf %21 : vector<16x128xf32>
    %23 = math.exp %22 : vector<16x128xf32>
    %cst_12 = arith.constant 1.000000e+00 : f32
    %24 = vector.broadcast %cst_12 : f32 to vector<16x128xf32>
    %25 = arith.addf %24, %23 : vector<16x128xf32>
    %26 = arith.divf %24, %25 : vector<16x128xf32>
    %27 = arith.mulf %21, %26 : vector<16x128xf32>
    %c0_13 = arith.constant 0 : index
    %c0_14 = arith.constant 0 : index
    %28 = vector.load %arg3[%c0_13, %c0_14] : memref<16x128xf32, #tpu.memory_space<vmem>>, vector<16x128xf32>
    %cst_15 = arith.constant dense<0.000000e+00> : vector<16xf32>
    %29 = vector.multi_reduction <add>, %28, %cst_15 [1] : vector<16x128xf32> to vector<16xf32>
    %30 = vector.shape_cast %29 : vector<16xf32> to vector<16x1xf32>
    %31 = arith.mulf %28, %28 : vector<16x128xf32>
    %cst_16 = arith.constant dense<0.000000e+00> : vector<16xf32>
    %32 = vector.multi_reduction <add>, %31, %cst_16 [1] : vector<16x128xf32> to vector<16xf32>
    %33 = vector.shape_cast %32 : vector<16xf32> to vector<16x1xf32>
    %cst_17 = arith.constant 3.125000e-02 : f32
    %34 = vector.broadcast %cst_17 : f32 to vector<16x1xf32>
    %35 = arith.mulf %30, %34 : vector<16x1xf32>
    %cst_18 = arith.constant 3.125000e-02 : f32
    %36 = vector.broadcast %cst_18 : f32 to vector<16x1xf32>
    %37 = arith.mulf %33, %36 : vector<16x1xf32>
    %38 = arith.mulf %35, %35 : vector<16x1xf32>
    %39 = arith.subf %37, %38 : vector<16x1xf32>
    %40 = vector.broadcast %35 : vector<16x1xf32> to vector<16x128xf32>
    %41 = arith.subf %28, %40 : vector<16x128xf32>
    %cst_19 = arith.constant 9.99999974E-6 : f32
    %42 = vector.broadcast %cst_19 : f32 to vector<16x1xf32>
    %43 = arith.addf %39, %42 : vector<16x1xf32>
    %44 = math.rsqrt %43 : vector<16x1xf32>
    %45 = vector.broadcast %44 : vector<16x1xf32> to vector<16x128xf32>
    %46 = arith.mulf %41, %45 : vector<16x128xf32>
    %c0_20 = arith.constant 0 : index
    %c0_21 = arith.constant 0 : index
    %c0_22 = arith.constant 0 : index
    %47 = vector.load %arg8[%c0_20, %c0_21, %c0_22] : memref<3x128x256xf32, #tpu.memory_space<vmem>>, vector<1x128x256xf32>
    %48 = vector.shape_cast %47 : vector<1x128x256xf32> to vector<128x256xf32>
    %cst_23 = arith.constant dense<0.000000e+00> : vector<16x256xf32>
    %49 = tpu.matmul %27, %48, %cst_23 {dimension_numbers = #tpu.dot_dimension_numbers<[1], [0], [0], [1], [0, 0, 1, 1], [], []>} : vector<16x128xf32>, vector<128x256xf32>, vector<16x256xf32> -> vector<16x256xf32>
    %50 = vector.extract_strided_slice %49 {offsets = [0, 0], sizes = [16, 128], strides = [1, 1]} : vector<16x256xf32> to vector<16x128xf32>
    %51 = vector.extract_strided_slice %49 {offsets = [0, 128], sizes = [16, 128], strides = [1, 1]} : vector<16x256xf32> to vector<16x128xf32>
    %cst_24 = arith.constant 1.000000e+00 : f32
    %52 = vector.broadcast %cst_24 : f32 to vector<16x128xf32>
    %53 = arith.addf %50, %52 : vector<16x128xf32>
    %54 = arith.mulf %46, %53 : vector<16x128xf32>
    %c0_25 = arith.constant 0 : index
    %c0_26 = arith.constant 0 : index
    %c0_27 = arith.constant 0 : index
    %55 = vector.load %arg9[%c0_25, %c0_26, %c0_27] : memref<3x128x128xf32, #tpu.memory_space<vmem>>, vector<1x128x128xf32>
    %56 = vector.shape_cast %55 : vector<1x128x128xf32> to vector<128x128xf32>
    %cst_28 = arith.constant dense<0.000000e+00> : vector<16x128xf32>
    %57 = tpu.matmul %54, %56, %cst_28 {dimension_numbers = #tpu.dot_dimension_numbers<[1], [0], [0], [1], [0, 0, 1, 1], [], []>} : vector<16x128xf32>, vector<128x128xf32>, vector<16x128xf32> -> vector<16x128xf32>
    %c0_29 = arith.constant 0 : index
    %c0_30 = arith.constant 0 : index
    %c0_31 = arith.constant 0 : index
    %58 = vector.load %arg10[%c0_29, %c0_30, %c0_31] : memref<3x1x128xf32, #tpu.memory_space<vmem>>, vector<1x1x128xf32>
    %59 = vector.shape_cast %58 : vector<1x1x128xf32> to vector<1x128xf32>
    %60 = vector.broadcast %59 : vector<1x128xf32> to vector<16x128xf32>
    %61 = arith.addf %57, %60 : vector<16x128xf32>
    %62 = arith.negf %61 : vector<16x128xf32>
    %63 = math.exp %62 : vector<16x128xf32>
    %cst_32 = arith.constant 1.000000e+00 : f32
    %64 = vector.broadcast %cst_32 : f32 to vector<16x128xf32>
    %65 = arith.addf %64, %63 : vector<16x128xf32>
    %66 = arith.divf %64, %65 : vector<16x128xf32>
    %67 = arith.mulf %61, %66 : vector<16x128xf32>
    %c0_33 = arith.constant 0 : index
    %c0_34 = arith.constant 0 : index
    %c0_35 = arith.constant 0 : index
    %68 = vector.load %arg11[%c0_33, %c0_34, %c0_35] : memref<3x128x128xf32, #tpu.memory_space<vmem>>, vector<1x128x128xf32>
    %69 = vector.shape_cast %68 : vector<1x128x128xf32> to vector<128x128xf32>
    %cst_36 = arith.constant dense<0.000000e+00> : vector<16x128xf32>
    %70 = tpu.matmul %67, %69, %cst_36 {dimension_numbers = #tpu.dot_dimension_numbers<[1], [0], [0], [1], [0, 0, 1, 1], [], []>} : vector<16x128xf32>, vector<128x128xf32>, vector<16x128xf32> -> vector<16x128xf32>
    %c0_37 = arith.constant 0 : index
    %c0_38 = arith.constant 0 : index
    %c0_39 = arith.constant 0 : index
    %71 = vector.load %arg12[%c0_37, %c0_38, %c0_39] : memref<3x1x128xf32, #tpu.memory_space<vmem>>, vector<1x1x128xf32>
    %72 = vector.shape_cast %71 : vector<1x1x128xf32> to vector<1x128xf32>
    %73 = vector.broadcast %72 : vector<1x128xf32> to vector<16x128xf32>
    %74 = arith.addf %70, %73 : vector<16x128xf32>
    %cst_40 = arith.constant 1.000000e+00 : f32
    %75 = vector.broadcast %cst_40 : f32 to vector<16x128xf32>
    %76 = arith.addf %51, %75 : vector<16x128xf32>
    %77 = arith.mulf %74, %76 : vector<16x128xf32>
    %78 = arith.addf %77, %28 : vector<16x128xf32>
    %cst_41 = arith.constant dense<0.000000e+00> : vector<16xf32>
    %79 = vector.multi_reduction <add>, %78, %cst_41 [1] : vector<16x128xf32> to vector<16xf32>
    %80 = vector.shape_cast %79 : vector<16xf32> to vector<16x1xf32>
    %81 = arith.mulf %78, %78 : vector<16x128xf32>
    %cst_42 = arith.constant dense<0.000000e+00> : vector<16xf32>
    %82 = vector.multi_reduction <add>, %81, %cst_42 [1] : vector<16x128xf32> to vector<16xf32>
    %83 = vector.shape_cast %82 : vector<16xf32> to vector<16x1xf32>
    %cst_43 = arith.constant 3.125000e-02 : f32
    %84 = vector.broadcast %cst_43 : f32 to vector<16x1xf32>
    %85 = arith.mulf %80, %84 : vector<16x1xf32>
    %cst_44 = arith.constant 3.125000e-02 : f32
    %86 = vector.broadcast %cst_44 : f32 to vector<16x1xf32>
    %87 = arith.mulf %83, %86 : vector<16x1xf32>
    %88 = arith.mulf %85, %85 : vector<16x1xf32>
    %89 = arith.subf %87, %88 : vector<16x1xf32>
    %90 = vector.broadcast %85 : vector<16x1xf32> to vector<16x128xf32>
    %91 = arith.subf %78, %90 : vector<16x128xf32>
    %cst_45 = arith.constant 9.99999974E-6 : f32
    %92 = vector.broadcast %cst_45 : f32 to vector<16x1xf32>
    %93 = arith.addf %89, %92 : vector<16x1xf32>
    %94 = math.rsqrt %93 : vector<16x1xf32>
    %95 = vector.broadcast %94 : vector<16x1xf32> to vector<16x128xf32>
    %96 = arith.mulf %91, %95 : vector<16x128xf32>
    %c1 = arith.constant 1 : index
    %c0_46 = arith.constant 0 : index
    %c0_47 = arith.constant 0 : index
    %97 = vector.load %arg8[%c1, %c0_46, %c0_47] : memref<3x128x256xf32, #tpu.memory_space<vmem>>, vector<1x128x256xf32>
    %98 = vector.shape_cast %97 : vector<1x128x256xf32> to vector<128x256xf32>
    %cst_48 = arith.constant dense<0.000000e+00> : vector<16x256xf32>
    %99 = tpu.matmul %27, %98, %cst_48 {dimension_numbers = #tpu.dot_dimension_numbers<[1], [0], [0], [1], [0, 0, 1, 1], [], []>} : vector<16x128xf32>, vector<128x256xf32>, vector<16x256xf32> -> vector<16x256xf32>
    %100 = vector.extract_strided_slice %99 {offsets = [0, 0], sizes = [16, 128], strides = [1, 1]} : vector<16x256xf32> to vector<16x128xf32>
    %101 = vector.extract_strided_slice %99 {offsets = [0, 128], sizes = [16, 128], strides = [1, 1]} : vector<16x256xf32> to vector<16x128xf32>
    %cst_49 = arith.constant 1.000000e+00 : f32
    %102 = vector.broadcast %cst_49 : f32 to vector<16x128xf32>
    %103 = arith.addf %100, %102 : vector<16x128xf32>
    %104 = arith.mulf %96, %103 : vector<16x128xf32>
    %c1_50 = arith.constant 1 : index
    %c0_51 = arith.constant 0 : index
    %c0_52 = arith.constant 0 : index
    %105 = vector.load %arg9[%c1_50, %c0_51, %c0_52] : memref<3x128x128xf32, #tpu.memory_space<vmem>>, vector<1x128x128xf32>
    %106 = vector.shape_cast %105 : vector<1x128x128xf32> to vector<128x128xf32>
    %cst_53 = arith.constant dense<0.000000e+00> : vector<16x128xf32>
    %107 = tpu.matmul %104, %106, %cst_53 {dimension_numbers = #tpu.dot_dimension_numbers<[1], [0], [0], [1], [0, 0, 1, 1], [], []>} : vector<16x128xf32>, vector<128x128xf32>, vector<16x128xf32> -> vector<16x128xf32>
    %c1_54 = arith.constant 1 : index
    %c0_55 = arith.constant 0 : index
    %c0_56 = arith.constant 0 : index
    %108 = vector.load %arg10[%c1_54, %c0_55, %c0_56] : memref<3x1x128xf32, #tpu.memory_space<vmem>>, vector<1x1x128xf32>
    %109 = vector.shape_cast %108 : vector<1x1x128xf32> to vector<1x128xf32>
    %110 = vector.broadcast %109 : vector<1x128xf32> to vector<16x128xf32>
    %111 = arith.addf %107, %110 : vector<16x128xf32>
    %112 = arith.negf %111 : vector<16x128xf32>
    %113 = math.exp %112 : vector<16x128xf32>
    %cst_57 = arith.constant 1.000000e+00 : f32
    %114 = vector.broadcast %cst_57 : f32 to vector<16x128xf32>
    %115 = arith.addf %114, %113 : vector<16x128xf32>
    %116 = arith.divf %114, %115 : vector<16x128xf32>
    %117 = arith.mulf %111, %116 : vector<16x128xf32>
    %c1_58 = arith.constant 1 : index
    %c0_59 = arith.constant 0 : index
    %c0_60 = arith.constant 0 : index
    %118 = vector.load %arg11[%c1_58, %c0_59, %c0_60] : memref<3x128x128xf32, #tpu.memory_space<vmem>>, vector<1x128x128xf32>
    %119 = vector.shape_cast %118 : vector<1x128x128xf32> to vector<128x128xf32>
    %cst_61 = arith.constant dense<0.000000e+00> : vector<16x128xf32>
    %120 = tpu.matmul %117, %119, %cst_61 {dimension_numbers = #tpu.dot_dimension_numbers<[1], [0], [0], [1], [0, 0, 1, 1], [], []>} : vector<16x128xf32>, vector<128x128xf32>, vector<16x128xf32> -> vector<16x128xf32>
    %c1_62 = arith.constant 1 : index
    %c0_63 = arith.constant 0 : index
    %c0_64 = arith.constant 0 : index
    %121 = vector.load %arg12[%c1_62, %c0_63, %c0_64] : memref<3x1x128xf32, #tpu.memory_space<vmem>>, vector<1x1x128xf32>
    %122 = vector.shape_cast %121 : vector<1x1x128xf32> to vector<1x128xf32>
    %123 = vector.broadcast %122 : vector<1x128xf32> to vector<16x128xf32>
    %124 = arith.addf %120, %123 : vector<16x128xf32>
    %cst_65 = arith.constant 1.000000e+00 : f32
    %125 = vector.broadcast %cst_65 : f32 to vector<16x128xf32>
    %126 = arith.addf %101, %125 : vector<16x128xf32>
    %127 = arith.mulf %124, %126 : vector<16x128xf32>
    %128 = arith.addf %127, %78 : vector<16x128xf32>
    %cst_66 = arith.constant dense<0.000000e+00> : vector<16xf32>
    %129 = vector.multi_reduction <add>, %128, %cst_66 [1] : vector<16x128xf32> to vector<16xf32>
    %130 = vector.shape_cast %129 : vector<16xf32> to vector<16x1xf32>
    %131 = arith.mulf %128, %128 : vector<16x128xf32>
    %cst_67 = arith.constant dense<0.000000e+00> : vector<16xf32>
    %132 = vector.multi_reduction <add>, %131, %cst_67 [1] : vector<16x128xf32> to vector<16xf32>
    %133 = vector.shape_cast %132 : vector<16xf32> to vector<16x1xf32>
    %cst_68 = arith.constant 3.125000e-02 : f32
    %134 = vector.broadcast %cst_68 : f32 to vector<16x1xf32>
    %135 = arith.mulf %130, %134 : vector<16x1xf32>
    %cst_69 = arith.constant 3.125000e-02 : f32
    %136 = vector.broadcast %cst_69 : f32 to vector<16x1xf32>
    %137 = arith.mulf %133, %136 : vector<16x1xf32>
    %138 = arith.mulf %135, %135 : vector<16x1xf32>
    %139 = arith.subf %137, %138 : vector<16x1xf32>
    %140 = vector.broadcast %135 : vector<16x1xf32> to vector<16x128xf32>
    %141 = arith.subf %128, %140 : vector<16x128xf32>
    %cst_70 = arith.constant 9.99999974E-6 : f32
    %142 = vector.broadcast %cst_70 : f32 to vector<16x1xf32>
    %143 = arith.addf %139, %142 : vector<16x1xf32>
    %144 = math.rsqrt %143 : vector<16x1xf32>
    %145 = vector.broadcast %144 : vector<16x1xf32> to vector<16x128xf32>
    %146 = arith.mulf %141, %145 : vector<16x128xf32>
    %c2 = arith.constant 2 : index
    %c0_71 = arith.constant 0 : index
    %c0_72 = arith.constant 0 : index
    %147 = vector.load %arg8[%c2, %c0_71, %c0_72] : memref<3x128x256xf32, #tpu.memory_space<vmem>>, vector<1x128x256xf32>
    %148 = vector.shape_cast %147 : vector<1x128x256xf32> to vector<128x256xf32>
    %cst_73 = arith.constant dense<0.000000e+00> : vector<16x256xf32>
    %149 = tpu.matmul %27, %148, %cst_73 {dimension_numbers = #tpu.dot_dimension_numbers<[1], [0], [0], [1], [0, 0, 1, 1], [], []>} : vector<16x128xf32>, vector<128x256xf32>, vector<16x256xf32> -> vector<16x256xf32>
    %150 = vector.extract_strided_slice %149 {offsets = [0, 0], sizes = [16, 128], strides = [1, 1]} : vector<16x256xf32> to vector<16x128xf32>
    %151 = vector.extract_strided_slice %149 {offsets = [0, 128], sizes = [16, 128], strides = [1, 1]} : vector<16x256xf32> to vector<16x128xf32>
    %cst_74 = arith.constant 1.000000e+00 : f32
    %152 = vector.broadcast %cst_74 : f32 to vector<16x128xf32>
    %153 = arith.addf %150, %152 : vector<16x128xf32>
    %154 = arith.mulf %146, %153 : vector<16x128xf32>
    %c2_75 = arith.constant 2 : index
    %c0_76 = arith.constant 0 : index
    %c0_77 = arith.constant 0 : index
    %155 = vector.load %arg9[%c2_75, %c0_76, %c0_77] : memref<3x128x128xf32, #tpu.memory_space<vmem>>, vector<1x128x128xf32>
    %156 = vector.shape_cast %155 : vector<1x128x128xf32> to vector<128x128xf32>
    %cst_78 = arith.constant dense<0.000000e+00> : vector<16x128xf32>
    %157 = tpu.matmul %154, %156, %cst_78 {dimension_numbers = #tpu.dot_dimension_numbers<[1], [0], [0], [1], [0, 0, 1, 1], [], []>} : vector<16x128xf32>, vector<128x128xf32>, vector<16x128xf32> -> vector<16x128xf32>
    %c2_79 = arith.constant 2 : index
    %c0_80 = arith.constant 0 : index
    %c0_81 = arith.constant 0 : index
    %158 = vector.load %arg10[%c2_79, %c0_80, %c0_81] : memref<3x1x128xf32, #tpu.memory_space<vmem>>, vector<1x1x128xf32>
    %159 = vector.shape_cast %158 : vector<1x1x128xf32> to vector<1x128xf32>
    %160 = vector.broadcast %159 : vector<1x128xf32> to vector<16x128xf32>
    %161 = arith.addf %157, %160 : vector<16x128xf32>
    %162 = arith.negf %161 : vector<16x128xf32>
    %163 = math.exp %162 : vector<16x128xf32>
    %cst_82 = arith.constant 1.000000e+00 : f32
    %164 = vector.broadcast %cst_82 : f32 to vector<16x128xf32>
    %165 = arith.addf %164, %163 : vector<16x128xf32>
    %166 = arith.divf %164, %165 : vector<16x128xf32>
    %167 = arith.mulf %161, %166 : vector<16x128xf32>
    %c2_83 = arith.constant 2 : index
    %c0_84 = arith.constant 0 : index
    %c0_85 = arith.constant 0 : index
    %168 = vector.load %arg11[%c2_83, %c0_84, %c0_85] : memref<3x128x128xf32, #tpu.memory_space<vmem>>, vector<1x128x128xf32>
    %169 = vector.shape_cast %168 : vector<1x128x128xf32> to vector<128x128xf32>
    %cst_86 = arith.constant dense<0.000000e+00> : vector<16x128xf32>
    %170 = tpu.matmul %167, %169, %cst_86 {dimension_numbers = #tpu.dot_dimension_numbers<[1], [0], [0], [1], [0, 0, 1, 1], [], []>} : vector<16x128xf32>, vector<128x128xf32>, vector<16x128xf32> -> vector<16x128xf32>
    %c2_87 = arith.constant 2 : index
    %c0_88 = arith.constant 0 : index
    %c0_89 = arith.constant 0 : index
    %171 = vector.load %arg12[%c2_87, %c0_88, %c0_89] : memref<3x1x128xf32, #tpu.memory_space<vmem>>, vector<1x1x128xf32>
    %172 = vector.shape_cast %171 : vector<1x1x128xf32> to vector<1x128xf32>
    %173 = vector.broadcast %172 : vector<1x128xf32> to vector<16x128xf32>
    %174 = arith.addf %170, %173 : vector<16x128xf32>
    %cst_90 = arith.constant 1.000000e+00 : f32
    %175 = vector.broadcast %cst_90 : f32 to vector<16x128xf32>
    %176 = arith.addf %151, %175 : vector<16x128xf32>
    %177 = arith.mulf %174, %176 : vector<16x128xf32>
    %178 = arith.addf %177, %128 : vector<16x128xf32>
    %c0_91 = arith.constant 0 : index
    %c0_92 = arith.constant 0 : index
    %179 = vector.load %arg13[%c0_91, %c0_92] : memref<16x128xf32, #tpu.memory_space<vmem>>, vector<16x128xf32>
    tpu.vector_store %arg13[%c0_91, %c0_92], %178 {strides = array<i32>} : memref<16x128xf32, #tpu.memory_space<vmem>>, vector<16x128xf32>,
    return
  }
  func.func @transform_0(%arg0: i32) -> (i32, i32) {
    %c0_i32 = arith.constant 0 : i32
    %c0_i32_0 = arith.constant 0 : i32
    return %arg0, %c0_i32 : i32, i32
  }
  func.func @transform_1(%arg0: i32) -> (i32, i32) {
    %c0_i32 = arith.constant 0 : i32
    %c0_i32_0 = arith.constant 0 : i32
    return %arg0, %c0_i32 : i32, i32
  }
  func.func @transform_2(%arg0: i32) -> (i32, i32) {
    %c0_i32 = arith.constant 0 : i32
    %c0_i32_0 = arith.constant 0 : i32
    return %arg0, %c0_i32 : i32, i32
  }
  func.func @transform_3(%arg0: i32) -> (i32, i32) {
    %c0_i32 = arith.constant 0 : i32
    %c0_i32_0 = arith.constant 0 : i32
    %c0_i32_1 = arith.constant 0 : i32
    return %c0_i32, %c0_i32_0 : i32, i32
  }
  func.func @transform_4(%arg0: i32) -> (i32, i32) {
    %c0_i32 = arith.constant 0 : i32
    %c0_i32_0 = arith.constant 0 : i32
    %c0_i32_1 = arith.constant 0 : i32
    return %c0_i32, %c0_i32_0 : i32, i32
  }
  func.func @transform_5(%arg0: i32) -> (i32, i32) {
    %c0_i32 = arith.constant 0 : i32
    %c0_i32_0 = arith.constant 0 : i32
    %c0_i32_1 = arith.constant 0 : i32
    return %c0_i32, %c0_i32_0 : i32, i32
  }
  func.func @transform_6(%arg0: i32) -> (i32, i32) {
    %c0_i32 = arith.constant 0 : i32
    %c0_i32_0 = arith.constant 0 : i32
    %c0_i32_1 = arith.constant 0 : i32
    return %c0_i32, %c0_i32_0 : i32, i32
  }
  func.func @transform_7(%arg0: i32) -> (i32, i32, i32) {
    %c0_i32 = arith.constant 0 : i32
    %c0_i32_0 = arith.constant 0 : i32
    %c0_i32_1 = arith.constant 0 : i32
    %c0_i32_2 = arith.constant 0 : i32
    return %c0_i32, %c0_i32_0, %c0_i32_1 : i32, i32, i32
  }
  func.func @transform_8(%arg0: i32) -> (i32, i32, i32) {
    %c0_i32 = arith.constant 0 : i32
    %c0_i32_0 = arith.constant 0 : i32
    %c0_i32_1 = arith.constant 0 : i32
    %c0_i32_2 = arith.constant 0 : i32
    return %c0_i32, %c0_i32_0, %c0_i32_1 : i32, i32, i32
  }
  func.func @transform_9(%arg0: i32) -> (i32, i32, i32) {
    %c0_i32 = arith.constant 0 : i32
    %c0_i32_0 = arith.constant 0 : i32
    %c0_i32_1 = arith.constant 0 : i32
    %c0_i32_2 = arith.constant 0 : i32
    return %c0_i32, %c0_i32_0, %c0_i32_1 : i32, i32, i32
  }
  func.func @transform_10(%arg0: i32) -> (i32, i32, i32) {
    %c0_i32 = arith.constant 0 : i32
    %c0_i32_0 = arith.constant 0 : i32
    %c0_i32_1 = arith.constant 0 : i32
    %c0_i32_2 = arith.constant 0 : i32
    return %c0_i32, %c0_i32_0, %c0_i32_1 : i32, i32, i32
  }
  func.func @transform_11(%arg0: i32) -> (i32, i32, i32) {
    %c0_i32 = arith.constant 0 : i32
    %c0_i32_0 = arith.constant 0 : i32
    %c0_i32_1 = arith.constant 0 : i32
    %c0_i32_2 = arith.constant 0 : i32
    return %c0_i32, %c0_i32_0, %c0_i32_1 : i32, i32, i32
  }
  func.func @transform_12(%arg0: i32) -> (i32, i32) {
    %c0_i32 = arith.constant 0 : i32
    %c0_i32_0 = arith.constant 0 : i32
    return %arg0, %c0_i32 : i32, i32
  }
}

</mosaic_0001>

<bundles_post_ra>
// kernel: tpu_custom_call.1
= control target key start
LH: loop header
LB: loop body
LE: loop exit
PB: predicated region body
PF: predicated region fallthrough
CT: control target
= control target key end

     0   :  { %17 = vsyncpa [#allocation3], 0  ;;  %s2759_s0 = inlined_call_operand.vmem [shape: f32[16,1], index: 0, kind: input, shape index: {}]   ;;  %s2760_s1 = inlined_call_operand.vmem [shape: f32[16,128], index: 1, kind: input, shape index: {}]   ;;  %s2761_s2 = inlined_call_operand.hbm [shape: f32[16,128], index: 2, kind: input, shape index: {}]   ;;  %s2762_s3 = inlined_call_operand.hbm [shape: f32[1,64], index: 3, kind: input, shape index: {}]   ;;  %s2763_s4 = inlined_call_operand.vmem [shape: f32[1,128], index: 4, kind: input, shape index: {}]   ;;  %s2764_s5 = inlined_call_operand.hbm [shape: f32[128,128], index: 5, kind: input, shape index: {}]   ;;  %s2765_s6 = inlined_call_operand.vmem [shape: f32[1,128], index: 6, kind: input, shape index: {}]   ;;  %s2766_s7 = inlined_call_operand.hbm [shape: f32[3,128,256], index: 7, kind: input, shape index: {}]   ;;  %s2767_s8 = inlined_call_operand.hbm [shape: f32[3,128,128], index: 8, kind: input, shape index: {}]   ;;  %s2768_s9 = inlined_call_operand.vmem [shape: f32[3,1,128], index: 9, kind: input, shape index: {}]   ;;  %s2769_s10 = inlined_call_operand.hbm [shape: f32[3,128,128], index: 10, kind: input, shape index: {}]   ;;  %s2770_s11 = inlined_call_operand.vmem [shape: f32[3,1,128], index: 11, kind: input, shape index: {}]   ;;  %s2771_s12 = inlined_call_operand.hbm [shape: f32[16,128], index: 12, kind: output, shape index: {}]  }
   0x1   :  { %18 = vsyncpa [#allocation6], 0 }
   0x2   :  { %19 = vsyncpa [#allocation9], 0 }
   0x3   :  { %20 = vsyncpa [#allocation12], 0 }
   0x4   :  { %21 = vsyncpa [#allocation4], 0  ;;  %s2442_s21 = smov [#allocation5]   ;;  %s2443_s23 = smov [#allocation8]  }
   0x5   :  { %s44_s22 = sshll.u32 %s2442_s21, 4  ;;  %s69_s24 = sshll.u32 %s2443_s23, 4  ;;  %s45_s22 = int_to_ptr.vmem [resolvable:$true] %s44_s22  ;;  %s70_s24 = int_to_ptr.vmem [resolvable:$true] %s69_s24 }
   0x6   :  { %s2300_s25 = scalar_lea.vmem %s45_s22, 16  ;;  %s2304_s26 = scalar_lea.vmem %s45_s22, 32 }
   0x7   :  { %p2301_p0 = scmp.ne.s32.totalorder %s45_s22, %s2300_s25  ;;  %p2305_p1 = scmp.lt.s32.totalorder %s45_s22, %s45_s22 }
   0x8   :  { %p2306_p2 = scmp.lt.s32.totalorder %s2304_s26, %s2300_s25 }
   0xa   :  { %p2307_p3 = por %p2306_p2, %p2305_p1 }
   0xc   :  { %p2308_p4 = pnand %p2307_p3, %p2301_p0 }
   0xe   :  { %2311 = shalt.err (!%p2308_p4)
}
   0xf   :  { %47 = dma.hbm_to_vmem [thread:$0]  %s2762_s3, 16, %s45_s22, [#allocation6]  }
  0x10   :  { %s2320_s29 = scalar_lea.vmem %s70_s24, 12288  ;;  %p2325_p6 = scmp.lt.s32.totalorder %s70_s24, %s70_s24 }
  0x11   :  { %p2321_p5 = scmp.ne.s32.totalorder %s70_s24, %s2320_s29  ;;  %p2326_p7 = scmp.lt.s32.totalorder %s2320_s29, %s2320_s29 }
  0x13   :  { %p2327_p8 = por %p2326_p7, %p2325_p6 }
  0x15   :  { %p2328_p9 = pnand %p2327_p8, %p2321_p5 }
  0x17   :  { %2331 = shalt.err (!%p2328_p9)
}
  0x18   :  { %s2444_s30 = smov 256   ;;  %s2445_s13 = smov 16  }
  0x19   :  { %75 = dma.hbm_to_vmem [thread:$0]  %s2766_s7, 12288, %s70_s24, [#allocation9], %s2444_s30, %s2444_s30, %s2445_s13  }
  0x1a   :  { %s2446_s16 = smov [#allocation2]  }
  0x1b   :  { %s31_s17 = sshll.u32 %s2446_s16, 4  ;;  %s32_s17 = int_to_ptr.vmem [resolvable:$true] %s31_s17 }
  0x1c   :  { %s2340_s18 = scalar_lea.vmem %s32_s17, 256  ;;  %p2345_p11 = scmp.lt.s32.totalorder %s32_s17, %s32_s17 }
  0x1d   :  { %p2341_p10 = scmp.ne.s32.totalorder %s32_s17, %s2340_s18  ;;  %p2346_p12 = scmp.lt.s32.totalorder %s2340_s18, %s2340_s18 }
  0x1f   :  { %p2347_p13 = por %p2346_p12, %p2345_p11 }
  0x21   :  { %p2348_p0 = pnand %p2347_p13, %p2341_p10 }
  0x23   :  { %2351 = shalt.err (!%p2348_p0)
}
  0x24   :  { %s2447_s3 = smov 128   ;;  %s2448_s19 = smov 8  }
  0x25   :  { %37 = dma.hbm_to_vmem [thread:$0]  %s2761_s2, 256, %s32_s17, [#allocation3], %s2447_s3, %s2447_s3, %s2448_s19  }
  0x26   :  { %s2449_s7 = smov [#allocation7]   ;;  %s2450_s23 = smov [#allocation10]  }
  0x27   :  { %s55_s22 = sshll.u32 %s2449_s7, 4  ;;  %s81_s24 = sshll.u32 %s2450_s23, 4  ;;  %s56_s22 = int_to_ptr.vmem [resolvable:$true] %s55_s22  ;;  %s82_s24 = int_to_ptr.vmem [resolvable:$true] %s81_s24 }
  0x28   :  { %s2360_s25 = scalar_lea.vmem %s56_s22, 2048  ;;  %p2365_p2 = scmp.lt.s32.totalorder %s56_s22, %s56_s22 }
  0x29   :  { %p2361_p1 = scmp.ne.s32.totalorder %s56_s22, %s2360_s25  ;;  %p2366_p3 = scmp.lt.s32.totalorder %s2360_s25, %s2360_s25 }
  0x2b   :  { %p2367_p4 = por %p2366_p3, %p2365_p2 }
  0x2d   :  { %p2368_p5 = pnand %p2367_p4, %p2361_p1 }
  0x2f   :  { %2371 = shalt.err (!%p2368_p5)
}
  0x30   :  { %61 = dma.hbm_to_vmem [thread:$0]  %s2764_s5, 2048, %s56_s22, [#allocation6], %s2447_s3, %s2447_s3, %s2448_s19  }
  0x31   :  { %s2380_s2 = scalar_lea.vmem %s82_s24, 6144  ;;  %p2385_p7 = scmp.lt.s32.totalorder %s82_s24, %s82_s24 }
  0x32   :  { %p2381_p6 = scmp.ne.s32.totalorder %s82_s24, %s2380_s2  ;;  %p2386_p8 = scmp.lt.s32.totalorder %s2380_s2, %s2380_s2 }
  0x34   :  { %p2387_p9 = por %p2386_p8, %p2385_p7 }
  0x36   :  { %p2388_p10 = pnand %p2387_p9, %p2381_p6 }
  0x38   :  { %2391 = shalt.err (!%p2388_p10)
}
  0x39   :  { %87 = dma.hbm_to_vmem [thread:$0]  %s2767_s8, 6144, %s82_s24, [#allocation9], %s2447_s3, %s2447_s3, %s2448_s19  }
  0x3a   :  { %s2451_s30 = smov [#allocation11]  }
  0x3b   :  { %s95_s13 = sshll.u32 %s2451_s30, 4  ;;  %s96_s13 = int_to_ptr.vmem [resolvable:$true] %s95_s13 }
  0x3c   :  { %s2400_s14 = scalar_lea.vmem %s96_s13, 6144  ;;  %p2405_p12 = scmp.lt.s32.totalorder %s96_s13, %s96_s13 }
  0x3d   :  { %p2401_p11 = scmp.ne.s32.totalorder %s96_s13, %s2400_s14  ;;  %p2406_p13 = scmp.lt.s32.totalorder %s2400_s14, %s2400_s14 }
  0x3f   :  { %p2407_p0 = por %p2406_p13, %p2405_p12 }
  0x41   :  { %p2408_p1 = pnand %p2407_p0, %p2401_p11 }
  0x43   :  { %2411 = shalt.err (!%p2408_p1)
}
  0x44   :  { %101 = dma.hbm_to_vmem [thread:$0]  %s2769_s10, 6144, %s96_s13, [#allocation12], %s2447_s3, %s2447_s3, %s2448_s19  }
  0x45   :  { %2432 = dma.done.wait [#allocation3], 256  }
  0x46   :  { %2433 = vsyncadd [#allocation3], 4294967040 }
  0x47   :  { %2434 = dma.done.wait [#allocation6], 2064  }
  0x48   :  { %2435 = vsyncadd [#allocation6], 4294965232 }
  0x49   :  { %2436 = dma.done.wait [#allocation9], 18432  }
  0x4a   :  { %2437 = vsyncadd [#allocation9], 4294948864 }
  0x4b   :  { %2438 = dma.done.wait [#allocation12], 6144  }
  0x4c   :  { %2439 = vsyncadd [#allocation12], 4294961152  ;;  %v2452_v0 = vmov 0   ;;  %v122_v1 = vld [vmem:[%s2759_s0] sm:$0xff]  ;;  %v123_v2 = vld [vmem:[%s2759_s0 + $0x8] sm:$0xff]  ;;  %s2459_s0 = smov 64  }
  0x4d   :  { %2234 = vset.pattern.permute.xlu0 %v2452_v0  ;;  %v594_v3 = vld [vmem:[#allocation7 + $0x78] sm:$0xff]  ;;  %v593_v4 = vld [vmem:[#allocation7 + $0x70] sm:$0xff]  ;;  %v592_v5 = vld [vmem:[#allocation7 + $0x68] sm:$0xff]  ;;  %v2453_v42 = vmov 2102212464   ;;  %s2461_s5 = smov [#allocation13]  }
  0x4e   :  { %127 = vperm.xlu0 %2234, %v122_v1   ;;  %1961 = vmatprep.subr.mxu0 %v594_v3  ;;  %v591_v6 = vld [vmem:[#allocation7 + $0x60] sm:$0xff]  ;;  %v590_v7 = vld [vmem:[#allocation7 + $0x58] sm:$0xff]  ;;  %v589_v8 = vld [vmem:[#allocation7 + $0x50] sm:$0xff]  ;;  %v2454_v44 = vmov 920167782   ;;  %s1783_s15 = sshll.u32 %s2461_s5, 4  ;;  %s1784_s15 = int_to_ptr.vmem [resolvable:$true] %s1783_s15 }
  0x4f   :  { %1962 = vmatpush3.msra.mxu0 %v594_v3  ;;  %v588_v9 = vld [vmem:[#allocation7 + $0x48] sm:$0xff]  ;;  %v587_v10 = vld [vmem:[#allocation7 + $0x40] sm:$0xff]  ;;  %v586_v11 = vld [vmem:[#allocation7 + $0x38] sm:$0xff]  ;;  %v2455_v48 = vmov 1326507024   ;;  %s2412_s8 = scalar_lea.vmem %s1784_s15, 256  ;;  %p2417_p3 = scmp.lt.s32.totalorder %s1784_s15, %s1784_s15 }
  0x50   :  { %1963 = vmatprep.subr.mxu0 %v593_v4  ;;  %v585_v12 = vld [vmem:[#allocation7 + $0x30] sm:$0xff]  ;;  %v584_v13 = vld [vmem:[#allocation7 + $0x28] sm:$0xff]  ;;  %v583_v14 = vld [vmem:[#allocation7 + $0x20] sm:$0xff]  ;;  %v2456_v52 = vmov 683565275   ;;  %p2413_p2 = scmp.ne.s32.totalorder %s1784_s15, %s2412_s8  ;;  %p2418_p4 = scmp.lt.s32.totalorder %s2412_s8, %s2412_s8 }
  0x51   :  { %1964 = vmatpush3.msra.mxu0 %v593_v4  ;;  %v1798_v15 = vld [vmem:[#allocation5] ss:$0 sm:$0xff]  ;;  %v581_v18 = vld [vmem:[#allocation7 + $0x10] sm:$0xff]  ;;  %v2457_v54 = vmov 2475754826  }
  0x52   :  { %132 = vperm.xlu0 %2234, %v123_v2   ;;  %1965 = vmatprep.subr.mxu0 %v592_v5  ;;  %v582_v16 = vld [vmem:[#allocation7 + $0x18] sm:$0xff]  ;;  %v2458_v56 = vmov 2131351028   ;;  %p2419_p5 = por %p2418_p4, %p2417_p3 }
  0x53   :  { %1966 = vmatpush3.msra.mxu0 %v592_v5 }
  0x54   :  { %1967 = vmatprep.subr.mxu0 %v591_v6  ;;  %p2420_p6 = pnand %p2419_p5, %p2413_p2 }
  0x55   :  { %1968 = vmatpush3.msra.mxu0 %v591_v6 }
  0x56   :  { %1969 = vmatprep.subr.mxu0 %v590_v7 }
  0x57   :  { %1970 = vmatpush3.msra.mxu0 %v590_v7 }
  0x58   :  { %1971 = vmatprep.subr.mxu0 %v589_v8 }
  0x59   :  { %1972 = vmatpush3.msra.mxu0 %v589_v8 }
  0x5a   :  { %1973 = vmatprep.subr.mxu0 %v588_v9 }
  0x5b   :  { %1974 = vmatpush3.msra.mxu0 %v588_v9 }
  0x5c   :  { %1975 = vmatprep.subr.mxu0 %v587_v10 }
  0x5d   :  { %1976 = vmatpush3.msra.mxu0 %v587_v10 }
  0x5e   :  { %1977 = vmatprep.subr.mxu0 %v586_v11 }
  0x5f   :  { %1978 = vmatpush3.msra.mxu0 %v586_v11 }
  0x60   :  { %1979 = vmatprep.subr.mxu0 %v585_v12 }
  0x61   :  { %1980 = vmatpush3.msra.mxu0 %v585_v12 }
  0x62   :  { %1981 = vmatprep.subr.mxu0 %v584_v13 }
  0x63   :  { %1982 = vmatpush3.msra.mxu0 %v584_v13 }
  0x64   :  { %1983 = vmatprep.subr.mxu0 %v583_v14 }
  0x65   :  { %1984 = vmatpush3.msra.mxu0 %v583_v14 }
  0x66   :  { %1985 = vmatprep.subr.mxu0 %v582_v16 }
  0x67   :  { %1986 = vmatpush3.msra.mxu0 %v582_v16 }
  0x68   :  { %1987 = vmatprep.subr.mxu0 %v581_v18 }
  0x69   :  { %1988 = vmatpush3.msra.mxu0 %v581_v18 }
  0xc9   :  { %v2563_v17 = vpop.permute.xlu0 %127 }
  0xca   :  { %v141_v19 = vmul.f32 %v1798_v15, %v2563_v17 }
  0xcc   :  { %v2566_v20 = vmul.f32 6.2831855, %v141_v19 }
  0xcd   :  { %v2568_v21 = vpop.permute.xlu0 %132 }
  0xce   :  { %v148_v22 = vand.u32 2139095040, %v2566_v20  ;;  %v142_v23 = vmul.f32 %v1798_v15, %v2568_v21  ;;  %v145_v24 = vand.u32 2147483647, %v2566_v20  ;;  %vm147_vm14 = vcmp.lt.s32.totalorder %v2566_v20, 0 }
  0xd0   :  { %v149_v25 = vshrl.u32 %v148_v22, 23  ;;  %v2573_v26 = vmul.f32 6.2831855, %v142_v23  ;;  %v152_v29 = vand.u32 8388607, %v145_v24 }
  0xd1   :  { %vm146_vm15 = vcmp.le.f32.partialorder %v145_v24, 0.7853982 }
  0xd2   :  { %v1799_v27 = vadd.s32 4294967169, %v149_v25  ;;  %v252_v28 = vand.u32 2139095040, %v2573_v26  ;;  %v249_v30 = vand.u32 2147483647, %v2573_v26  ;;  %v153_v34 = vor.u32 8388608, %v152_v29 }
  0xd4   :  { %v155_v31 = vadd.s32 1, %v1799_v27  ;;  %v253_v32 = vshrl.u32 %v252_v28, 23  ;;  %v2581_v36 = vand.u32 8388607, %v249_v30  ;;  %v2583_v41 = vshll.u32 %v153_v34, 8 }
  0xd6   :  { %vm156_vm0 = vcmp.gt.s32.totalorder %v155_v31, 0  ;;  %v1803_v33 = vadd.s32 4294967169, %v253_v32  ;;  %v257_v46 = vor.u32 8388608, %v2581_v36 }
  0xd7   :  { %v157_v35 = vsel %vm156_vm0, %v155_v31, 0  ;;  %vm251_vm0 = vcmp.lt.s32.totalorder %v2573_v26, 0 }
  0xd8   :  { %v158_v37 = vshrl.u32 %v157_v35, 5  ;;  %v159_v38 = vand.u32 31, %v157_v35  ;;  %v259_v39 = vadd.s32 1, %v1803_v33 }
  0xda   :  { %v160_v40 = vsub.s32 32, %v159_v38  ;;  %v171_v43 = vshll.u32 %v2453_v42, %v159_v38  ;;  %v174_v45 = vshll.u32 %v2454_v44, %v159_v38  ;;  %vm260_vm1 = vcmp.gt.s32.totalorder %v259_v39, 0 }
  0xdb   :  { %vm180_vm2 = vcmp.lt.s32.totalorder %v158_v37, 4  ;;  %v261_v50 = vsel %vm260_vm1, %v259_v39, 0  ;;  %v162_v53 = vshll.u32 %v2456_v52, %v159_v38  ;;  %v165_v60 = vshll.u32 %v2457_v54, %v159_v38 }
  0xdc   :  { %v172_v47 = vshrl.u32 %v2454_v44, %v160_v40  ;;  %v175_v49 = vshrl.u32 %v2455_v48, %v160_v40  ;;  %v263_v51 = vand.u32 31, %v261_v50  ;;  %v163_v55 = vshrl.u32 %v2457_v54, %v160_v40 }
  0xdd   :  { %v166_v57 = vshrl.u32 %v2458_v56, %v160_v40  ;;  %v169_v61 = vshrl.u32 %v2453_v42, %v160_v40  ;;  %v2587_v62 = vshrl.u32 %v261_v50, 5  ;;  %v168_v0 = vshll.u32 %v2458_v56, %v159_v38 }
  0xde   :  { %v173_v58 = vor.u32 %v172_v47, %v171_v43  ;;  %v176_v59 = vor.u32 %v175_v49, %v174_v45  ;;  %v264_v63 = vsub.s32 32, %v263_v51  ;;  %vm177_vm3 = vcmp.lt.s32.totalorder %v158_v37, 1 }
  0xdf   :  { %v278_v2 = vshll.u32 %v2454_v44, %v263_v51  ;;  %v164_v3 = vor.u32 %v163_v55, %v162_v53  ;;  %v167_v4 = vor.u32 %v166_v57, %v165_v60  ;;  %v170_v8 = vor.u32 %v169_v61, %v168_v0 }
  0xe0   :  { %v186_v1 = vsel %vm180_vm2, %v173_v58, 920167782  ;;  %v190_v5 = vsel %vm180_vm2, %v176_v59, 1326507024  ;;  %v276_v6 = vshrl.u32 %v2454_v44, %v264_v63  ;;  %v279_v7 = vshrl.u32 %v2455_v48, %v264_v63 }
  0xe1   :  { %v275_v9 = vshll.u32 %v2453_v42, %v263_v51  ;;  %v161_v10 = vshrl.u32 %v2456_v52, %v160_v40  ;;  %vm179_vm4 = vcmp.lt.s32.totalorder %v158_v37, 3  ;;  %v185_v11 = vsel %vm177_vm3, %v164_v3, %v167_v4 }
  0xe2   :  { %v280_v12 = vor.u32 %v279_v7, %v278_v2  ;;  %vm178_vm5 = vcmp.lt.s32.totalorder %v158_v37, 2  ;;  %v182_v13 = vsel %vm180_vm2, %v170_v8, 2102212464  ;;  %v187_v14 = vsel %vm179_vm4, %v170_v8, %v186_v1 }
  0xe3   :  { %vm284_vm6 = vcmp.lt.s32.totalorder %v2587_v62, 4  ;;  %v188_v15 = vsel %vm178_vm5, %v185_v11, %v187_v14  ;;  %v189_v16 = vsel %vm177_vm3, %v167_v4, %v170_v8  ;;  %v191_v18 = vsel %vm179_vm4, %v173_v58, %v190_v5 }
  0xe4   :  { %v277_v19 = vor.u32 %v276_v6, %v275_v9  ;;  %v181_v22 = vsel %vm177_vm3, %v161_v10, %v164_v3  ;;  %v183_v23 = vsel %vm179_vm4, %v167_v4, %v182_v13  ;;  %v192_v25 = vsel %vm178_vm5, %v189_v16, %v191_v18 }
  0xe5   :  { %v2600_v27 = vmul.u32.u64.low %v2583_v41, %v192_v25  ;;  %v2601_v28 = vmul.u32.u64.high %v2583_v41, %v192_v25, %v2600_v27  ;;  %v2604_v29 = vmul.u32.u64.low %v2583_v41, %v188_v15  ;;  %v2605_v31 = vmul.u32.u64.high %v2583_v41, %v188_v15, %v2604_v29 }
  0xe6   :  { %v294_v32 = vsel %vm284_vm6, %v280_v12, 1326507024  ;;  %v266_v33 = vshll.u32 %v2456_v52, %v263_v51  ;;  %v267_v34 = vshrl.u32 %v2457_v54, %v264_v63  ;;  %v184_v35 = vsel %vm178_vm5, %v181_v22, %v183_v23 }
  0xe7   :  { %v269_v36 = vshll.u32 %v2457_v54, %v263_v51  ;;  %v270_v38 = vshrl.u32 %v2458_v56, %v264_v63  ;;  %v273_v39 = vshrl.u32 %v2453_v42, %v264_v63  ;;  %v290_v40 = vsel %vm284_vm6, %v277_v19, 920167782 }
  0xe8   :  { %v268_v43 = vor.u32 %v267_v34, %v266_v33  ;;  %v272_v44 = vshll.u32 %v2458_v56, %v263_v51  ;;  %v297_v45 = vshll.u32 %v257_v46, 8  ;;  %vm202_vm7 = vc.u32 %v2601_v28, %v2604_v29 }
  0xe9   :  { %v203_v47 = vadd.s32 1, %v2605_v31  ;;  %v271_v48 = vor.u32 %v270_v38, %v269_v36  ;;  %vm283_vm8 = vcmp.lt.s32.totalorder %v2587_v62, 3  ;;  %v200_v49 = vmul.u32 %v2583_v41, %v184_v35 }
  0xea   :  { %v274_v37 = vor.u32 %v273_v39, %v272_v44  ;;  %vm281_vm9 = vcmp.lt.s32.totalorder %v2587_v62, 1  ;;  %v295_v42 = vsel %vm283_vm8, %v277_v19, %v294_v32  ;;  %v265_v51 = vshrl.u32 %v2456_v52, %v264_v63 }
  0xeb   :  { %v204_v50 = vsel %vm202_vm7, %v203_v47, %v2605_v31  ;;  %vm282_vm10 = vcmp.lt.s32.totalorder %v2587_v62, 2  ;;  %v289_v46 = vsel %vm281_vm9, %v268_v43, %v271_v48  ;;  %v201_v18 = vadd.s32 %v2604_v29, %v2601_v28 }
  0xec   :  { %v205_v53 = vadd.s32 %v204_v50, %v200_v49  ;;  %v286_v54 = vsel %vm284_vm6, %v274_v37, 2102212464  ;;  %v291_v41 = vsel %vm283_vm8, %v274_v37, %v290_v40  ;;  %v293_v55 = vsel %vm281_vm9, %v271_v48, %v274_v37 }
  0xed   :  { %v285_v56 = vsel %vm281_vm9, %v265_v51, %v268_v43  ;;  %v292_v57 = vsel %vm282_vm10, %v289_v46, %v291_v41  ;;  %v296_v58 = vsel %vm282_vm10, %v293_v55, %v295_v42  ;;  %v287_v60 = vsel %vm283_vm8, %v271_v48, %v286_v54 }
  0xee   :  { %v206_v59 = vadd.s32 536870912, %v205_v53  ;;  %v2629_v61 = vmul.u32.u64.low %v297_v45, %v296_v58  ;;  %v2630_v52 = vmul.u32.u64.high %v297_v45, %v296_v58, %v2629_v61  ;;  %v288_v2 = vsel %vm282_vm10, %v285_v56, %v287_v60 }
  0xef   :  { %v2632_v63 = vmul.u32.u64.low %v297_v45, %v292_v57  ;;  %v2633_v0 = vmul.u32.u64.high %v297_v45, %v292_v57, %v2632_v63  ;;  %v304_v6 = vmul.u32 %v297_v45, %v288_v2  ;;  %vm250_vm1 = vcmp.le.f32.partialorder %v249_v30, 0.7853982 }
  0xf0   :  { %v207_v1 = vshrl.u32 %v206_v59, 30  ;;  %vm237_vm5 = vweird.f32 %v2566_v20 }
  0xf1   :  { %vm306_vm11 = vc.u32 %v2630_v52, %v2632_v63  ;;  %v307_v4 = vadd.s32 1, %v2633_v0  ;;  %v305_v45 = vadd.s32 %v2632_v63, %v2630_v52 }
  0xf2   :  { %v208_v3 = vshll.u32 %v207_v1, 30  ;;  %v231_v42 = vsub.s32 4, %v207_v1 }
  0xf3   :  { %v308_v7 = vsel %vm306_vm11, %v307_v4, %v2633_v0 }
  0xf4   :  { %v209_v5 = vsub.s32 %v205_v53, %v208_v3  ;;  %v309_v62 = vadd.s32 %v308_v7, %v304_v6  ;;  %v232_v41 = vsel %vm147_vm14, %v231_v42, %v207_v1  ;;  %v751_v42 = vld [vmem:[#allocation8 + $0xc0] sm:$0xff] }
  0xf5   :  { %v234_v57 = vsel %vm146_vm15, 0, %v232_v41  ;;  %v745_v41 = vld [vmem:[#allocation8 + $0x90] sm:$0xff] }
  0xf6   :  { %v211_v8 = vsub.s32 0, %v209_v5  ;;  %v310_v10 = vadd.s32 536870912, %v309_v62  ;;  %v238_v61 = vadd.s32 3, %v234_v57  ;;  %v446_v30 = vand.u32 3, %v234_v57  ;;  %v742_v57 = vld [vmem:[#allocation8 + $0x78] sm:$0xff] }
  0xf8   :  { %v1800_v9 = vmin.u32 %v211_v8, %v209_v5  ;;  %v311_v12 = vshrl.u32 %v310_v10, 30  ;;  %v239_v0 = vand.u32 3, %v238_v61  ;;  %v579_v10 = vld [vmem:[#allocation7] sm:$0xff]  ;;  %vm448_vm6 = vcmp.eq.s32.totalorder %v446_v30, 0 }
  0xf9   :  { %vm451_vm7 = vcmp.eq.s32.totalorder %v446_v30, 2  ;;  %vm447_vm8 = vcmp.lt.s32.totalorder %v446_v30, 2  ;;  %v2460_v61 = vmov 0.0   ;;  %v2655_v30 = vld [vmem:[#allocation2] sm:$0xff] }
  0xfa   :  { %v213_v11 = vclz %v1800_v9  ;;  %v312_v14 = vshll.u32 %v311_v12, 30  ;;  %v335_v60 = vsub.s32 4, %v311_v12  ;;  %vm244_vm2 = vcmp.eq.s32.totalorder %v239_v0, 2  ;;  %v580_v9 = vld [vmem:[#allocation7 + $0x8] sm:$0xff]  ;;  %823 = vmatprep.mubr.f32.mxu1 %v2460_v61 }
  0xfb   :  { %vm241_vm3 = vcmp.eq.s32.totalorder %v239_v0, 0  ;;  %vm240_vm4 = vcmp.lt.s32.totalorder %v239_v0, 2  ;;  %1989 = vmatprep.subr.mxu0 %v580_v9  ;;  %v735_v0 = vld [vmem:[#allocation8 + $0x40] sm:$0xff] }
  0xfc   :  { %v1801_v13 = vadd.s32 4294967294, %v213_v11  ;;  %v313_v15 = vsub.s32 %v309_v62, %v312_v14  ;;  %v336_v63 = vsel %vm251_vm0, %v335_v60, %v311_v12  ;;  %1990 = vmatpush3.msra.mxu0 %v580_v9  ;;  %v739_v60 = vld [vmem:[#allocation8 + $0x60] sm:$0xff] }
  0xfd   :  { %v338_v4 = vsel %vm250_vm1, 0, %v336_v63  ;;  %1991 = vmatprep.subr.mxu0 %v579_v10  ;;  %v736_v63 = vld [vmem:[#allocation8 + $0x48] sm:$0xff] }
  0xfe   :  { %vm1802_vm12 = vcmp.lt.s32.totalorder %v1801_v13, 0  ;;  %v315_v23 = vsub.s32 0, %v313_v15  ;;  %v342_v8 = vadd.s32 3, %v338_v4  ;;  %v549_v12 = vand.u32 3, %v338_v4  ;;  %1992 = vmatpush3.msra.mxu0 %v579_v10  ;;  %v731_v4 = vld [vmem:[#allocation8 + $0x20] sm:$0xff] }
  0xff   :  { %v216_v16 = vsel %vm1802_vm12, 0, %v1801_v13  ;;  %v705_v10 = vmul.f32 %v2655_v30, %v2655_v30 }
 0x100   :  { %v217_v19 = vsub.s32 32, %v216_v16  ;;  %v221_v22 = vsub.s32 4294967266, %v216_v16  ;;  %v218_v25 = vshll.u32 %v209_v5, %v216_v16  ;;  %v1804_v32 = vmin.u32 %v315_v23, %v313_v15 }
 0x101   :  { %v343_v13 = vand.u32 3, %v342_v8  ;;  %vm551_vm9 = vcmp.eq.s32.totalorder %v549_v12, 0  ;;  %vm554_vm10 = vcmp.eq.s32.totalorder %v549_v12, 2  ;;  %v727_v8 = vld [vmem:[#allocation8] sm:$0xff] }
 0x102   :  { %v219_v27 = vshrl.u32 %v201_v18, %v217_v19  ;;  %v222_v31 = vadd.s32 127, %v221_v22  ;;  %v317_v35 = vclz %v1804_v32 }
 0x103   :  { %vm348_vm11 = vcmp.eq.s32.totalorder %v343_v13, 2  ;;  %vm345_vm12 = vcmp.eq.s32.totalorder %v343_v13, 0 }
 0x104   :  { %v220_v33 = vor.u32 %v219_v27, %v218_v25  ;;  %v223_v34 = vshll.u32 %v222_v31, 23  ;;  %v1805_v38 = vadd.s32 4294967294, %v317_v35 }
 0x106   :  { %v224_v36 = vor.u32 4788187, %v223_v34  ;;  %v227_v40 = vcvt.s32.f32 %v220_v33  ;;  %vm1806_vm13 = vcmp.lt.s32.totalorder %v1805_v38, 0 }
 0x107   :  { %v320_v43 = vsel %vm1806_vm13, 0, %v1805_v38  ;;  %vm550_vm13 = vcmp.lt.s32.totalorder %v549_v12, 2  ;;  %v854_v12 = vld [vmem:[#allocation10 + $0x70] sm:$0xff] }
 0x108   :  { %v225_v39 = vand.u32 2147483647, %v224_v36  ;;  %v321_v28 = vsub.s32 32, %v320_v43  ;;  %v325_v29 = vsub.s32 4294967266, %v320_v43  ;;  %v322_v48 = vshll.u32 %v313_v15, %v320_v43 }
 0x10a   :  { %v228_v44 = vmul.f32 %v227_v40, %v225_v39  ;;  %v323_v49 = vshrl.u32 %v305_v45, %v321_v28  ;;  %v326_v37 = vadd.s32 127, %v325_v29  ;;  %v758_v29 = vld [vmem:[#allocation8 + $0xf8] sm:$0xff] }
 0x10b   :  { %759 = vmatprep.subr.mxu1 %v758_v29 }
 0x10c   :  { %v229_v47 = vxor.u32 2147483648, %v228_v44  ;;  %v324_v51 = vor.u32 %v323_v49, %v322_v48  ;;  %v327_v46 = vshll.u32 %v326_v37, 23  ;;  %v754_v48 = vld [vmem:[#allocation8 + $0xd8] sm:$0xff]  ;;  %v753_v49 = vld [vmem:[#allocation8 + $0xd0] sm:$0xff]  ;;  %v752_v37 = vld [vmem:[#allocation8 + $0xc8] sm:$0xff] }
 0x10e   :  { %v230_v50 = vsel %vm147_vm14, %v229_v47, %v228_v44  ;;  %v328_v54 = vor.u32 4788187, %v327_v46  ;;  %v331_v56 = vcvt.s32.f32 %v324_v51  ;;  %vm344_vm14 = vcmp.lt.s32.totalorder %v343_v13, 2  ;;  %v756_v47 = vld [vmem:[#allocation8 + $0xe8] sm:$0xff]  ;;  %v749_v51 = vld [vmem:[#allocation8 + $0xb0] sm:$0xff] }
 0x10f   :  { %v233_v53 = vsel %vm146_vm15, %v2566_v20, %v230_v50  ;;  %vm341_vm15 = vweird.f32 %v2573_v26  ;;  %v755_v20 = vld [vmem:[#allocation8 + $0xe0] sm:$0xff]  ;;  %v750_v50 = vld [vmem:[#allocation8 + $0xb8] sm:$0xff]  ;;  %v748_v46 = vld [vmem:[#allocation8 + $0xa8] sm:$0xff] }
 0x110   :  { %2240 = vcosq.f32 %v233_v53  ;;  %v329_v55 = vand.u32 2147483647, %v328_v54  ;;  %v746_v54 = vld [vmem:[#allocation8 + $0x98] sm:$0xff]  ;;  %v853_v13 = vld [vmem:[#allocation10 + $0x68] sm:$0xff] }
 0x111   :  { %2242 = vsinq.f32 %v233_v53  ;;  %v747_v53 = vld [vmem:[#allocation8 + $0xa0] sm:$0xff] }
 0x112   :  { %v332_v58 = vmul.f32 %v331_v56, %v329_v55  ;;  %v744_v55 = vld [vmem:[#allocation8 + $0x88] sm:$0xff]  ;;  %v743_v56 = vld [vmem:[#allocation8 + $0x80] sm:$0xff] }
 0x114   :  { %v333_v59 = vxor.u32 2147483648, %v332_v58 }
 0x116   :  { %v334_v24 = vsel %vm251_vm0, %v333_v59, %v332_v58  ;;  %vm567_vm0 = vcmask 523264   ;;  %v741_v58 = vld [vmem:[#allocation8 + $0x70] sm:$0xff]  ;;  %v740_v59 = vld [vmem:[#allocation8 + $0x68] sm:$0xff] }
 0x117   :  { %v337_v52 = vsel %vm250_vm1, %v2573_v26, %v334_v24  ;;  %v757_v26 = vld [vmem:[#allocation8 + $0xf0] sm:$0xff]  ;;  %v738_v24 = vld [vmem:[#allocation8 + $0x58] sm:$0xff] }
 0x118   :  { %2244 = vcosq.f32 %v337_v52  ;;  %760 = vmatpush1.msra.mxu1 %v757_v26 }
 0x119   :  { %2246 = vsinq.f32 %v337_v52  ;;  %761 = vmatprep.subr.mxu1 %v756_v47  ;;  %v737_v52 = vld [vmem:[#allocation8 + $0x50] sm:$0xff] }
 0x11a   :  { %762 = vmatpush1.msra.mxu1 %v755_v20 }
 0x11b   :  { %763 = vmatprep.subr.mxu1 %v754_v48 }
 0x11c   :  { %764 = vmatpush1.msra.mxu1 %v753_v49 }
 0x11d   :  { %v2241_v1 = vpop.eup %2240  ;;  %765 = vmatprep.subr.mxu1 %v752_v37 }
 0x11e   :  { %v2243_v2 = vpop.eup %2242  ;;  %v245_v3 = vxor.u32 2147483648, %v2241_v1  ;;  %766 = vmatpush1.msra.mxu1 %v751_v42 }
 0x11f   :  { %v242_v5 = vxor.u32 2147483648, %v2243_v2  ;;  %767 = vmatprep.subr.mxu1 %v750_v50 }
 0x120   :  { %v246_v6 = vsel %vm244_vm2, %v245_v3, %v2243_v2  ;;  %v453_v16 = vsel %vm451_vm7, %v245_v3, %v2243_v2  ;;  %768 = vmatpush1.msra.mxu1 %v749_v51  ;;  %v733_v2 = vld [vmem:[#allocation8 + $0x30] sm:$0xff]  ;;  %v732_v3 = vld [vmem:[#allocation8 + $0x28] sm:$0xff]  ;;  %v843_v51 = vld [vmem:[#allocation10 + $0x18] sm:$0xff] }
 0x121   :  { %v243_v7 = vsel %vm241_vm3, %v2241_v1, %v242_v5  ;;  %v450_v15 = vsel %vm448_vm6, %v2241_v1, %v242_v5  ;;  %769 = vmatprep.subr.mxu1 %v748_v46  ;;  %v734_v1 = vld [vmem:[#allocation8 + $0x38] sm:$0xff]  ;;  %v842_v46 = vld [vmem:[#allocation10 + $0x10] sm:$0xff] }
 0x122   :  { %v247_v62 = vsel %vm240_vm4, %v243_v7, %v246_v6  ;;  %v454_v23 = vsel %vm447_vm8, %v450_v15, %v453_v16  ;;  %770 = vmatpush1.msra.mxu1 %v747_v53  ;;  %v730_v5 = vld [vmem:[#allocation8 + $0x18] sm:$0xff]  ;;  %v729_v6 = vld [vmem:[#allocation8 + $0x10] sm:$0xff]  ;;  %v728_v7 = vld [vmem:[#allocation8 + $0x8] sm:$0xff] }
 0x123   :  { %v248_v11 = vsel %vm237_vm5, nan, %v247_v62  ;;  %v455_v35 = vsel %vm237_vm5, nan, %v454_v23  ;;  %771 = vmatprep.subr.mxu1 %v746_v54  ;;  %v2657_v62 = vld [vmem:[#allocation2 + $0x8] sm:$0xff]  ;;  %v841_v53 = vld [vmem:[#allocation10 + $0x8] sm:$0xff]  ;;  %v840_v54 = vld [vmem:[#allocation10] sm:$0xff] }
 0x124   :  { %772 = vmatpush1.msra.mxu1 %v745_v41  ;;  %703 = vadd.xlane.f32.xlu0 %v2657_v62  ;;  %v706_v9 = vmul.f32 %v2657_v62, %v2657_v62  ;;  %v851_v15 = vld [vmem:[#allocation10 + $0x58] sm:$0xff]  ;;  %v850_v16 = vld [vmem:[#allocation10 + $0x50] sm:$0xff] }
 0x125   :  { %v2245_v14 = vpop.eup %2244  ;;  %773 = vmatprep.subr.mxu1 %v744_v55  ;;  %v846_v23 = vld [vmem:[#allocation10 + $0x30] sm:$0xff]  ;;  %v1114_v41 = vld [vmem:[#allocation8 + $0x1f8] sm:$0xff] }
 0x126   :  { %v2247_v18 = vpop.eup %2246  ;;  %v349_v19 = vxor.u32 2147483648, %v2245_v14  ;;  %774 = vmatpush1.msra.mxu1 %v743_v56 }
 0x127   :  { %v346_v22 = vxor.u32 2147483648, %v2247_v18  ;;  %775 = vmatprep.subr.mxu1 %v742_v57 }
 0x128   :  { %v556_v25 = vsel %vm554_vm10, %v349_v19, %v2247_v18  ;;  %v350_v27 = vsel %vm348_vm11, %v349_v19, %v2247_v18  ;;  %776 = vmatpush1.msra.mxu1 %v741_v58  ;;  %707 = vadd.xlane.f32.xlu0 %v705_v10  ;;  %v849_v18 = vld [vmem:[#allocation10 + $0x48] sm:$0xff]  ;;  %v848_v19 = vld [vmem:[#allocation10 + $0x40] sm:$0xff] }
 0x129   :  { %v553_v31 = vsel %vm551_vm9, %v2245_v14, %v346_v22  ;;  %v347_v32 = vsel %vm345_vm12, %v2245_v14, %v346_v22  ;;  %777 = vmatprep.subr.mxu1 %v740_v59  ;;  %v852_v14 = vld [vmem:[#allocation10 + $0x60] sm:$0xff]  ;;  %v847_v22 = vld [vmem:[#allocation10 + $0x38] sm:$0xff] }
 0x12a   :  { %v557_v33 = vsel %vm550_vm13, %v553_v31, %v556_v25  ;;  %v351_v34 = vsel %vm344_vm14, %v347_v32, %v350_v27  ;;  %778 = vmatpush1.msra.mxu1 %v739_v60  ;;  %v845_v25 = vld [vmem:[#allocation10 + $0x28] sm:$0xff]  ;;  %v844_v27 = vld [vmem:[#allocation10 + $0x20] sm:$0xff] }
 0x12b   :  { %v558_v36 = vsel %vm341_vm15, nan, %v557_v33  ;;  %v352_v38 = vsel %vm341_vm15, nan, %v351_v34  ;;  %779 = vmatprep.subr.mxu1 %v738_v24  ;;  %v1815_v31 = vld [vmem:[%s2763_s4] ss:$0 sm:$0xff] }
 0x12c   :  { %v2235_v39 = vpack.i.bf16 %v558_v36, %v455_v35  ;;  %780 = vmatpush1.msra.mxu1 %v737_v52  ;;  %v578_v32 = vmul.f32 %v1815_v31, %v2568_v21  ;;  %v1816_v34 = vld [vmem:[%s2765_s6] ss:$0 sm:$0xff]  ;;  %v577_v35 = vmul.f32 %v1815_v31, %v2563_v17 }
 0x12d   :  { %781 = vmatprep.subr.mxu1 %v736_v63  ;;  %v1108_v31 = vld [vmem:[#allocation8 + $0x1c8] sm:$0xff] }
 0x12e   :  { %2236 = vrot.lane.b32.xlu1 %v2235_v39, %s2459_s0  ;;  %782 = vmatpush1.msra.mxu1 %v735_v0 }
 0x12f   :  { %783 = vmatprep.subr.mxu1 %v734_v1 }
 0x130   :  { %784 = vmatpush1.msra.mxu1 %v733_v2 }
 0x131   :  { %785 = vmatprep.subr.mxu1 %v732_v3 }
 0x132   :  { %786 = vmatpush1.msra.mxu1 %v731_v4 }
 0x133   :  { %787 = vmatprep.subr.mxu1 %v730_v5 }
 0x134   :  { %788 = vmatpush1.msra.mxu1 %v729_v6 }
 0x135   :  { %789 = vmatprep.subr.mxu1 %v728_v7 }
 0x136   :  { %790 = vmatpush1.msra.mxu1 %v727_v8 }
 0x152   :  { %701 = vadd.xlane.f32.xlu1 %v2655_v30 }
 0x156   :  { %709 = vadd.xlane.f32.xlu1 %v706_v9 }
 0x1a0   :  { %v2237_v40 = vpop.permute.xlu1 %2236 }
 0x1a1   :  { %v2239_v43 = vunpack.i.h.bf16 %v2237_v40  ;;  %v2238_v44 = vunpack.i.l.bf16 %v2237_v40 }
 0x1a3   :  { %v568_v45 = vsel %vm567_vm0, %v248_v11, %v2238_v44  ;;  %v569_v28 = vsel %vm567_vm0, %v352_v38, %v2239_v43  ;;  %v855_v11 = vld [vmem:[#allocation10 + $0x78] sm:$0xff]  ;;  %v681_v44 = vld [vmem:[%s2760_s1] sm:$0xff] }
 0x1a4   :  { %1993 = vmatprep.mubr.f32.mxu0 %v568_v45  ;;  %1996 = vmatprep.subr.mxu0 %v855_v11  ;;  %v682_v38 = vld [vmem:[%s2760_s1 + $0x8] sm:$0xff] }
 0x1a5   :  { %1994 = vmatmul.mubr.f32.vlgmr.msra.gmra.mxu0 %v569_v28 }
 0x1a6   :  { %1997 = vmatpush3.msra.mxu0 %v855_v11 }
 0x1a7   :  { %1998 = vmatprep.subr.mxu0 %v854_v12 }
 0x1a8   :  { %1999 = vmatpush3.msra.mxu0 %v854_v12 }
 0x1a9   :  { %2000 = vmatprep.subr.mxu0 %v853_v13 }
 0x1aa   :  { %2001 = vmatpush3.msra.mxu0 %v853_v13 }
 0x1ab   :  { %2002 = vmatprep.subr.mxu0 %v852_v14 }
 0x1ac   :  { %2003 = vmatpush3.msra.mxu0 %v852_v14 }
 0x1ad   :  { %2004 = vmatprep.subr.mxu0 %v851_v15  ;;  %v704_v55 = vpop.xlane.xlu0 %703 }
 0x1ae   :  { %2005 = vmatpush3.msra.mxu0 %v851_v15  ;;  %v712_v60 = vmul.f32 0.03125, %v704_v55  ;;  %v966_v55 = vld [vmem:[#allocation11 + $0x70] sm:$0xff] }
 0x1af   :  { %2006 = vmatprep.subr.mxu0 %v850_v16 }
 0x1b0   :  { %2007 = vmatpush3.msra.mxu0 %v850_v16  ;;  %v716_v63 = vmul.f32 %v712_v60, %v712_v60  ;;  %v720_v8 = vsub.f32 %v2657_v62, %v712_v60  ;;  %v961_v60 = vld [vmem:[#allocation11 + $0x48] sm:$0xff] }
 0x1b1   :  { %2008 = vmatprep.subr.mxu0 %v849_v18  ;;  %v708_v58 = vpop.xlane.xlu0 %707 }
 0x1b2   :  { %2009 = vmatpush3.msra.mxu0 %v849_v18  ;;  %v713_v24 = vmul.f32 0.03125, %v708_v58  ;;  %v963_v58 = vld [vmem:[#allocation11 + $0x58] sm:$0xff] }
 0x1b3   :  { %2010 = vmatprep.subr.mxu0 %v848_v19 }
 0x1b4   :  { %2011 = vmatpush3.msra.mxu0 %v848_v19  ;;  %v1113_v19 = vld [vmem:[#allocation8 + $0x1f0] sm:$0xff] }
 0x1b5   :  { %2012 = vmatprep.subr.mxu0 %v847_v22 }
 0x1b6   :  { %2013 = vmatpush3.msra.mxu0 %v847_v22  ;;  %v1112_v22 = vld [vmem:[#allocation8 + $0x1e8] sm:$0xff] }
 0x1b7   :  { %2014 = vmatprep.subr.mxu0 %v846_v23 }
 0x1b8   :  { %2015 = vmatpush3.msra.mxu0 %v846_v23  ;;  %v1111_v23 = vld [vmem:[#allocation8 + $0x1e0] sm:$0xff] }
 0x1b9   :  { %2016 = vmatprep.subr.mxu0 %v845_v25 }
 0x1ba   :  { %2017 = vmatpush3.msra.mxu0 %v845_v25  ;;  %v1110_v25 = vld [vmem:[#allocation8 + $0x1d8] sm:$0xff] }
 0x1bb   :  { %2018 = vmatprep.subr.mxu0 %v844_v27 }
 0x1bc   :  { %2019 = vmatpush3.msra.mxu0 %v844_v27  ;;  %v1109_v27 = vld [vmem:[#allocation8 + $0x1d0] sm:$0xff] }
 0x1bd   :  { %2020 = vmatprep.subr.mxu0 %v843_v51 }
 0x1be   :  { %2021 = vmatpush3.msra.mxu0 %v843_v51  ;;  %v1086_v51 = vld [vmem:[#allocation8 + $0x118] sm:$0xff] }
 0x1bf   :  { %2022 = vmatprep.subr.mxu0 %v842_v46 }
 0x1c0   :  { %2023 = vmatpush3.msra.mxu0 %v842_v46  ;;  %v1085_v46 = vld [vmem:[#allocation8 + $0x110] sm:$0xff] }
 0x1c1   :  { %2024 = vmatprep.subr.mxu0 %v841_v53 }
 0x1c2   :  { %2025 = vmatpush3.msra.mxu0 %v841_v53  ;;  %v1084_v53 = vld [vmem:[#allocation8 + $0x108] sm:$0xff] }
 0x1c3   :  { %2026 = vmatprep.subr.mxu0 %v840_v54 }
 0x1c4   :  { %2027 = vmatpush3.msra.mxu0 %v840_v54  ;;  %v1083_v54 = vld [vmem:[#allocation8 + $0x100] sm:$0xff] }
 0x1c5   :  { %1115 = vmatprep.subr.mxu0 %v1114_v41  ;;  %v967_v41 = vld [vmem:[#allocation11 + $0x78] sm:$0xff] }
 0x1c6   :  { %2031 = vmatprep.subr.mxu1 %v967_v41 }
 0x1db   :  { %v702_v56 = vpop.xlane.xlu1 %701 }
 0x1dc   :  { %v711_v57 = vmul.f32 0.03125, %v702_v56  ;;  %v965_v56 = vld [vmem:[#allocation11 + $0x68] sm:$0xff] }
 0x1de   :  { %v715_v59 = vmul.f32 %v711_v57, %v711_v57  ;;  %v719_v5 = vsub.f32 %v2655_v30, %v711_v57  ;;  %v964_v57 = vld [vmem:[#allocation11 + $0x60] sm:$0xff] }
 0x1df   :  { %v710_v52 = vpop.xlane.xlu1 %709 }
 0x1e0   :  { %v714_v0 = vmul.f32 0.03125, %v710_v52  ;;  %v717_v1 = vsub.f32 %v713_v24, %v715_v59  ;;  %v962_v59 = vld [vmem:[#allocation11 + $0x50] sm:$0xff]  ;;  %v960_v24 = vld [vmem:[#allocation11 + $0x40] sm:$0xff]  ;;  %v959_v52 = vld [vmem:[#allocation11 + $0x38] sm:$0xff] }
 0x1e2   :  { %v718_v2 = vsub.f32 %v714_v0, %v716_v63  ;;  %v721_v3 = vadd.f32 1e-05, %v717_v1  ;;  %v958_v63 = vld [vmem:[#allocation11 + $0x30] sm:$0xff]  ;;  %v957_v0 = vld [vmem:[#allocation11 + $0x28] sm:$0xff]  ;;  %v956_v1 = vld [vmem:[#allocation11 + $0x20] sm:$0xff] }
 0x1e4   :  { %v722_v4 = vadd.f32 1e-05, %v718_v2  ;;  %v955_v2 = vld [vmem:[#allocation11 + $0x18] sm:$0xff] }
 0x265   :  { %v1995_v33 = vpop.f32.mrf.mxu0 }
 0x266   :  { %v671_v36 = vadd.f32 %v1995_v33, %v578_v32  ;;  %v1107_v32 = vld [vmem:[#allocation8 + $0x1c0] sm:$0xff]  ;;  %v1106_v33 = vld [vmem:[#allocation8 + $0x1b8] sm:$0xff] }
 0x267   :  { %v661_v39 = vpop.f32.mrf.mxu0 }
 0x268   :  { %v680_v40 = vadd.f32 %v1816_v34, %v671_v36  ;;  %v670_v43 = vadd.f32 %v661_v39, %v577_v35  ;;  %v1104_v35 = vld [vmem:[#allocation8 + $0x1a8] sm:$0xff]  ;;  %v1103_v36 = vld [vmem:[#allocation8 + $0x1a0] sm:$0xff]  ;;  %v1101_v39 = vld [vmem:[#allocation8 + $0x190] sm:$0xff] }
 0x26a   :  { %v684_v21 = vadd.f32 %v682_v38, %v680_v40  ;;  %v679_v45 = vadd.f32 %v1816_v34, %v670_v43  ;;  %v1105_v34 = vld [vmem:[#allocation8 + $0x1b0] sm:$0xff]  ;;  %v1102_v38 = vld [vmem:[#allocation8 + $0x198] sm:$0xff]  ;;  %v1100_v40 = vld [vmem:[#allocation8 + $0x188] sm:$0xff] }
 0x26b   :  { %v1099_v43 = vld [vmem:[#allocation8 + $0x180] sm:$0xff] }
 0x26c   :  { %v1818_v28 = vmul.f32 -1.442695, %v684_v21  ;;  %v683_v29 = vadd.f32 %v681_v44, %v679_v45  ;;  %v1098_v44 = vld [vmem:[#allocation8 + $0x178] sm:$0xff]  ;;  %v1096_v45 = vld [vmem:[#allocation8 + $0x168] sm:$0xff] }
 0x26e   :  { %2248 = vpow2.f32 %v1818_v28  ;;  %v1817_v26 = vmul.f32 -1.442695, %v683_v29  ;;  %v1095_v28 = vld [vmem:[#allocation8 + $0x160] sm:$0xff] }
 0x270   :  { %2250 = vpow2.f32 %v1817_v26  ;;  %v1093_v26 = vld [vmem:[#allocation8 + $0x150] sm:$0xff] }
 0x27b   :  { %v2249_v17 = vpop.eup %2248 }
 0x27c   :  { %v692_v20 = vadd.f32 1.0, %v2249_v17  ;;  %v1092_v17 = vld [vmem:[#allocation8 + $0x148] sm:$0xff] }
 0x27d   :  { %v2251_v47 = vpop.eup %2250 }
 0x27e   :  { %v691_v48 = vadd.f32 1.0, %v2251_v47  ;;  %v1091_v47 = vld [vmem:[#allocation8 + $0x140] sm:$0xff] }
 0x280   :  { %2252 = vrcp.f32 %v691_v48  ;;  %v1089_v48 = vld [vmem:[#allocation8 + $0x130] sm:$0xff] }
 0x281   :  { %2254 = vrcp.f32 %v692_v20  ;;  %v1090_v20 = vld [vmem:[#allocation8 + $0x138] sm:$0xff] }
 0x282   :  { %2256 = vrsqrt.f32 %v721_v3  ;;  %v954_v3 = vld [vmem:[#allocation11 + $0x10] sm:$0xff] }
 0x283   :  { %2258 = vrsqrt.f32 %v722_v4  ;;  %v953_v4 = vld [vmem:[#allocation11 + $0x8] sm:$0xff] }
 0x28d   :  { %v2253_v49 = vpop.eup %2252 }
 0x28e   :  { %v2679_v37 = vmul.f32 %v2253_v49, %v683_v29  ;;  %v2255_v42 = vpop.eup %2254  ;;  %v1094_v29 = vld [vmem:[#allocation8 + $0x158] sm:$0xff]  ;;  %v1088_v49 = vld [vmem:[#allocation8 + $0x128] sm:$0xff] }
 0x28f   :  { %v2683_v50 = vmul.f32 %v2255_v42, %v684_v21  ;;  %v2257_v6 = vpop.eup %2256  ;;  %v1097_v21 = vld [vmem:[#allocation8 + $0x170] sm:$0xff]  ;;  %v1087_v42 = vld [vmem:[#allocation8 + $0x120] sm:$0xff] }
 0x290   :  { %824 = vmatmul.mubr.f32.vlgmr.msra.gmra.mxu1 %v2679_v37  ;;  %v725_v9 = vmul.f32 %v2257_v6, %v719_v5  ;;  %v2259_v11 = vpop.eup %2258  ;;  %v952_v5 = vld [vmem:[#allocation11] sm:$0xff]  ;;  %v1819_v6 = vld [vmem:[%s2768_s9] ss:$0 sm:$0xff] }
 0x291   :  { %829 = vmatprep.mubr.f32.mxu1 %v2460_v61  ;;  %v726_v15 = vmul.f32 %v2259_v11, %v720_v8  ;;  %2032 = vmatpush3.msra.mxu1 %v967_v41  ;;  %v1474_v41 = vld [vmem:[#allocation8 + $0x2f8] sm:$0xff] }
 0x292   :  { %2033 = vmatprep.subr.mxu1 %v966_v55 }
 0x293   :  { %2034 = vmatpush3.msra.mxu1 %v966_v55 }
 0x294   :  { %830 = vmatmul.mubr.f32.gmra.mxu1 %v2683_v50  ;;  %2035 = vmatprep.subr.mxu1 %v965_v56 }
 0x295   :  { %2036 = vmatpush3.msra.mxu1 %v965_v56 }
 0x296   :  { %2037 = vmatprep.subr.mxu1 %v964_v57 }
 0x297   :  { %2038 = vmatpush3.msra.mxu1 %v964_v57 }
 0x298   :  { %2039 = vmatprep.subr.mxu1 %v963_v58 }
 0x299   :  { %2040 = vmatpush3.msra.mxu1 %v963_v58 }
 0x29a   :  { %2041 = vmatprep.subr.mxu1 %v962_v59 }
 0x29b   :  { %2042 = vmatpush3.msra.mxu1 %v962_v59 }
 0x29c   :  { %2043 = vmatprep.subr.mxu1 %v961_v60 }
 0x29d   :  { %2044 = vmatpush3.msra.mxu1 %v961_v60 }
 0x29e   :  { %2045 = vmatprep.subr.mxu1 %v960_v24 }
 0x29f   :  { %2046 = vmatpush3.msra.mxu1 %v960_v24 }
 0x2a0   :  { %2047 = vmatprep.subr.mxu1 %v959_v52 }
 0x2a1   :  { %2048 = vmatpush3.msra.mxu1 %v959_v52 }
 0x2a2   :  { %2049 = vmatprep.subr.mxu1 %v958_v63 }
 0x2a3   :  { %2050 = vmatpush3.msra.mxu1 %v958_v63 }
 0x2a4   :  { %2051 = vmatprep.subr.mxu1 %v957_v0 }
 0x2a5   :  { %2052 = vmatpush3.msra.mxu1 %v957_v0 }
 0x2a6   :  { %2053 = vmatprep.subr.mxu1 %v956_v1 }
 0x2a7   :  { %2054 = vmatpush3.msra.mxu1 %v956_v1 }
 0x2a8   :  { %2055 = vmatprep.subr.mxu1 %v955_v2 }
 0x2a9   :  { %2056 = vmatpush3.msra.mxu1 %v955_v2 }
 0x2aa   :  { %2057 = vmatprep.subr.mxu1 %v954_v3 }
 0x2ab   :  { %2058 = vmatpush3.msra.mxu1 %v954_v3 }
 0x2ac   :  { %2059 = vmatprep.subr.mxu1 %v953_v4 }
 0x2ad   :  { %2060 = vmatpush3.msra.mxu1 %v953_v4 }
 0x2ae   :  { %2061 = vmatprep.subr.mxu1 %v952_v5 }
 0x2af   :  { %2062 = vmatpush3.msra.mxu1 %v952_v5 }
 0x350   :  { %v825_v7 = vpop.f32.mrf.mxu1 }
 0x351   :  { %v836_v10 = vadd.f32 1.0, %v825_v7 }
 0x352   :  { %v2688_v12 = vpop.f32.mrf.mxu1 }
 0x353   :  { %v838_v13 = vmul.f32 %v836_v10, %v725_v9 }
 0x354   :  { %v831_v14 = vpop.f32.mrf.mxu1 }
 0x355   :  { %v837_v16 = vadd.f32 1.0, %v831_v14  ;;  %2028 = vmatprep.mubr.f32.mxu0 %v838_v13 }
 0x357   :  { %v839_v18 = vmul.f32 %v837_v16, %v726_v15 }
 0x359   :  { %2029 = vmatmul.mubr.f32.vlgmr.msra.gmra.mxu0 %v839_v18 }
 0x35a   :  { %1116 = vmatpush1.msra.mxu0 %v1113_v19  ;;  %1179 = vmatprep.mubr.f32.mxu0 %v2460_v61 }
 0x35b   :  { %1117 = vmatprep.subr.mxu0 %v1112_v22 }
 0x35c   :  { %1118 = vmatpush1.msra.mxu0 %v1111_v23 }
 0x35d   :  { %1119 = vmatprep.subr.mxu0 %v1110_v25 }
 0x35e   :  { %1120 = vmatpush1.msra.mxu0 %v1109_v27  ;;  %v1212_v27 = vld [vmem:[#allocation10 + $0xf8] sm:$0xff] }
 0x35f   :  { %1121 = vmatprep.subr.mxu0 %v1108_v31  ;;  %2066 = vmatprep.subr.mxu1 %v1212_v27  ;;  %v833_v31 = vpop.f32.mrf.mxu1 }
 0x360   :  { %1122 = vmatpush1.msra.mxu0 %v1107_v32  ;;  %v1822_v32 = vld [vmem:[%s2770_s11] ss:$0 sm:$0xff] }
 0x361   :  { %1123 = vmatprep.subr.mxu0 %v1106_v33 }
 0x362   :  { %1124 = vmatpush1.msra.mxu0 %v1105_v34  ;;  %v1051_v34 = vadd.f32 1.0, %v833_v31  ;;  %v1469_v31 = vld [vmem:[#allocation8 + $0x2d0] sm:$0xff] }
 0x363   :  { %1125 = vmatprep.subr.mxu0 %v1104_v35 }
 0x364   :  { %1126 = vmatpush1.msra.mxu0 %v1103_v36 }
 0x365   :  { %1127 = vmatprep.subr.mxu0 %v1102_v38  ;;  %v1050_v38 = vadd.f32 1.0, %v2688_v12 }
 0x366   :  { %1128 = vmatpush1.msra.mxu0 %v1101_v39 }
 0x367   :  { %1129 = vmatprep.subr.mxu0 %v1100_v40 }
 0x368   :  { %1130 = vmatpush1.msra.mxu0 %v1099_v43 }
 0x369   :  { %1131 = vmatprep.subr.mxu0 %v1098_v44 }
 0x36a   :  { %1132 = vmatpush1.msra.mxu0 %v1097_v21 }
 0x36b   :  { %1133 = vmatprep.subr.mxu0 %v1096_v45 }
 0x36c   :  { %1134 = vmatpush1.msra.mxu0 %v1095_v28  ;;  %v1211_v28 = vld [vmem:[#allocation10 + $0xf0] sm:$0xff] }
 0x36d   :  { %1135 = vmatprep.subr.mxu0 %v1094_v29  ;;  %v1208_v29 = vld [vmem:[#allocation10 + $0xd8] sm:$0xff] }
 0x36e   :  { %1136 = vmatpush1.msra.mxu0 %v1093_v26  ;;  %v1207_v26 = vld [vmem:[#allocation10 + $0xd0] sm:$0xff] }
 0x36f   :  { %1137 = vmatprep.subr.mxu0 %v1092_v17  ;;  %v1206_v17 = vld [vmem:[#allocation10 + $0xc8] sm:$0xff] }
 0x370   :  { %1138 = vmatpush1.msra.mxu0 %v1091_v47  ;;  %v1205_v47 = vld [vmem:[#allocation10 + $0xc0] sm:$0xff] }
 0x371   :  { %1139 = vmatprep.subr.mxu0 %v1090_v20  ;;  %v1204_v20 = vld [vmem:[#allocation10 + $0xb8] sm:$0xff] }
 0x372   :  { %1140 = vmatpush1.msra.mxu0 %v1089_v48  ;;  %v1203_v48 = vld [vmem:[#allocation10 + $0xb0] sm:$0xff] }
 0x373   :  { %1141 = vmatprep.subr.mxu0 %v1088_v49  ;;  %v1202_v49 = vld [vmem:[#allocation10 + $0xa8] sm:$0xff] }
 0x374   :  { %1142 = vmatpush1.msra.mxu0 %v1087_v42  ;;  %v1201_v42 = vld [vmem:[#allocation10 + $0xa0] sm:$0xff] }
 0x375   :  { %1143 = vmatprep.subr.mxu0 %v1086_v51  ;;  %v1200_v51 = vld [vmem:[#allocation10 + $0x98] sm:$0xff] }
 0x376   :  { %1144 = vmatpush1.msra.mxu0 %v1085_v46  ;;  %v1199_v46 = vld [vmem:[#allocation10 + $0x90] sm:$0xff] }
 0x377   :  { %1145 = vmatprep.subr.mxu0 %v1084_v53  ;;  %v1198_v53 = vld [vmem:[#allocation10 + $0x88] sm:$0xff] }
 0x378   :  { %1146 = vmatpush1.msra.mxu0 %v1083_v54  ;;  %v1197_v54 = vld [vmem:[#allocation10 + $0x80] sm:$0xff] }
 0x379   :  { %1180 = vmatmul.mubr.f32.vlgmr.msra.gmra.mxu0 %v2679_v37 }
 0x37a   :  { %1185 = vmatprep.mubr.f32.mxu0 %v2460_v61 }
 0x37d   :  { %1186 = vmatmul.mubr.f32.gmra.mxu0 %v2683_v50 }
 0x419   :  { %v2030_v7 = vpop.f32.mrf.mxu0 }
 0x41a   :  { %v935_v8 = vadd.f32 %v2030_v7, %v1819_v6 }
 0x41b   :  { %v929_v9 = vpop.f32.mrf.mxu0 }
 0x41c   :  { %v1821_v10 = vmul.f32 -1.442695, %v935_v8  ;;  %v930_v11 = vadd.f32 %v1819_v6, %v929_v9 }
 0x41e   :  { %2260 = vpow2.f32 %v1821_v10  ;;  %v1820_v13 = vmul.f32 -1.442695, %v930_v11 }
 0x420   :  { %2262 = vpow2.f32 %v1820_v13 }
 0x42b   :  { %v2261_v14 = vpop.eup %2260 }
 0x42c   :  { %v945_v15 = vadd.f32 1.0, %v2261_v14 }
 0x42d   :  { %v2263_v16 = vpop.eup %2262 }
 0x42e   :  { %v944_v18 = vadd.f32 1.0, %v2263_v16  ;;  %2264 = vrcp.f32 %v945_v15 }
 0x430   :  { %2266 = vrcp.f32 %v944_v18 }
 0x439   :  { %v1181_v5 = vpop.f32.mrf.mxu0 }
 0x43a   :  { %v1192_v14 = vadd.f32 1.0, %v1181_v5 }
 0x43b   :  { %v2265_v19 = vpop.eup %2264  ;;  %v2713_v6 = vpop.f32.mrf.mxu0 }
 0x43c   :  { %v951_v25 = vmul.f32 %v2265_v19, %v935_v8 }
 0x43d   :  { %v2267_v22 = vpop.eup %2266  ;;  %v1187_v9 = vpop.f32.mrf.mxu0 }
 0x43e   :  { %v950_v23 = vmul.f32 %v2267_v22, %v930_v11  ;;  %v1193_v16 = vadd.f32 1.0, %v1187_v9  ;;  %v1473_v22 = vld [vmem:[#allocation8 + $0x2f0] sm:$0xff] }
 0x440   :  { %2063 = vmatprep.mubr.f32.mxu1 %v950_v23  ;;  %v1472_v23 = vld [vmem:[#allocation8 + $0x2e8] sm:$0xff] }
 0x441   :  { %2064 = vmatmul.mubr.f32.vlgmr.msra.gmra.mxu1 %v951_v25  ;;  %v1471_v25 = vld [vmem:[#allocation8 + $0x2e0] sm:$0xff] }
 0x442   :  { %2067 = vmatpush3.msra.mxu1 %v1212_v27  ;;  %v1470_v27 = vld [vmem:[#allocation8 + $0x2d8] sm:$0xff] }
 0x443   :  { %2068 = vmatprep.subr.mxu1 %v1211_v28 }
 0x444   :  { %2069 = vmatpush3.msra.mxu1 %v1211_v28  ;;  %v1457_v28 = vld [vmem:[#allocation8 + $0x270] sm:$0xff] }
 0x501   :  { %v2065_v33 = vpop.f32.mrf.mxu1 }
 0x502   :  { %v1047_v35 = vadd.f32 %v2065_v33, %v1822_v32  ;;  %v1467_v33 = vld [vmem:[#allocation8 + $0x2c0] sm:$0xff] }
 0x503   :  { %v1041_v36 = vpop.f32.mrf.mxu1 }
 0x504   :  { %v1053_v39 = vmul.f32 %v1051_v34, %v1047_v35  ;;  %v1042_v40 = vadd.f32 %v1822_v32, %v1041_v36  ;;  %v1468_v32 = vld [vmem:[#allocation8 + $0x2c8] sm:$0xff]  ;;  %v1466_v34 = vld [vmem:[#allocation8 + $0x2b8] sm:$0xff]  ;;  %v1465_v35 = vld [vmem:[#allocation8 + $0x2b0] sm:$0xff] }
 0x505   :  { %v1464_v36 = vld [vmem:[#allocation8 + $0x2a8] sm:$0xff] }
 0x506   :  { %v2702_v43 = vadd.f32 %v1053_v39, %v2657_v62  ;;  %v1052_v44 = vmul.f32 %v1050_v38, %v1042_v40  ;;  %v1210_v62 = vld [vmem:[#allocation10 + $0xe8] sm:$0xff]  ;;  %v1463_v38 = vld [vmem:[#allocation8 + $0x2a0] sm:$0xff]  ;;  %v1462_v39 = vld [vmem:[#allocation8 + $0x298] sm:$0xff] }
 0x507   :  { %2070 = vmatprep.subr.mxu1 %v1210_v62  ;;  %v1461_v40 = vld [vmem:[#allocation8 + $0x290] sm:$0xff] }
 0x508   :  { %v2705_v21 = vadd.f32 %v1052_v44, %v2655_v30  ;;  %1058 = vadd.xlane.f32.xlu1 %v2702_v43  ;;  %v1061_v45 = vmul.f32 %v2702_v43, %v2702_v43  ;;  %2071 = vmatpush3.msra.mxu1 %v1210_v62  ;;  %v1209_v30 = vld [vmem:[#allocation10 + $0xe0] sm:$0xff]  ;;  %v1460_v44 = vld [vmem:[#allocation8 + $0x288] sm:$0xff] }
 0x509   :  { %2072 = vmatprep.subr.mxu1 %v1209_v30  ;;  %v1456_v62 = vld [vmem:[#allocation8 + $0x268] sm:$0xff] }
 0x50a   :  { %1056 = vadd.xlane.f32.xlu0 %v2705_v21  ;;  %v1060_v12 = vmul.f32 %v2705_v21, %v2705_v21  ;;  %2073 = vmatpush3.msra.mxu1 %v1209_v30  ;;  %v1455_v30 = vld [vmem:[#allocation8 + $0x260] sm:$0xff] }
 0x50b   :  { %2074 = vmatprep.subr.mxu1 %v1208_v29 }
 0x50c   :  { %1064 = vadd.xlane.f32.xlu1 %v1061_v45  ;;  %2075 = vmatpush3.msra.mxu1 %v1208_v29  ;;  %v1459_v45 = vld [vmem:[#allocation8 + $0x280] sm:$0xff]  ;;  %v1454_v29 = vld [vmem:[#allocation8 + $0x258] sm:$0xff] }
 0x50d   :  { %2076 = vmatprep.subr.mxu1 %v1207_v26 }
 0x50e   :  { %1062 = vadd.xlane.f32.xlu0 %v1060_v12  ;;  %2077 = vmatpush3.msra.mxu1 %v1207_v26  ;;  %v1458_v12 = vld [vmem:[#allocation8 + $0x278] sm:$0xff]  ;;  %v1453_v26 = vld [vmem:[#allocation8 + $0x250] sm:$0xff] }
 0x50f   :  { %2078 = vmatprep.subr.mxu1 %v1206_v17 }
 0x510   :  { %2079 = vmatpush3.msra.mxu1 %v1206_v17  ;;  %v1452_v17 = vld [vmem:[#allocation8 + $0x248] sm:$0xff] }
 0x511   :  { %2080 = vmatprep.subr.mxu1 %v1205_v47 }
 0x512   :  { %2081 = vmatpush3.msra.mxu1 %v1205_v47  ;;  %v1451_v47 = vld [vmem:[#allocation8 + $0x240] sm:$0xff] }
 0x513   :  { %2082 = vmatprep.subr.mxu1 %v1204_v20 }
 0x514   :  { %2083 = vmatpush3.msra.mxu1 %v1204_v20  ;;  %v1450_v20 = vld [vmem:[#allocation8 + $0x238] sm:$0xff] }
 0x515   :  { %2084 = vmatprep.subr.mxu1 %v1203_v48 }
 0x516   :  { %2085 = vmatpush3.msra.mxu1 %v1203_v48  ;;  %v1449_v48 = vld [vmem:[#allocation8 + $0x230] sm:$0xff] }
 0x517   :  { %2086 = vmatprep.subr.mxu1 %v1202_v49 }
 0x518   :  { %2087 = vmatpush3.msra.mxu1 %v1202_v49  ;;  %v1448_v49 = vld [vmem:[#allocation8 + $0x228] sm:$0xff] }
 0x519   :  { %2088 = vmatprep.subr.mxu1 %v1201_v42 }
 0x51a   :  { %2089 = vmatpush3.msra.mxu1 %v1201_v42  ;;  %v1447_v42 = vld [vmem:[#allocation8 + $0x220] sm:$0xff] }
 0x51b   :  { %2090 = vmatprep.subr.mxu1 %v1200_v51 }
 0x51c   :  { %2091 = vmatpush3.msra.mxu1 %v1200_v51  ;;  %v1446_v51 = vld [vmem:[#allocation8 + $0x218] sm:$0xff] }
 0x51d   :  { %2092 = vmatprep.subr.mxu1 %v1199_v46 }
 0x51e   :  { %2093 = vmatpush3.msra.mxu1 %v1199_v46  ;;  %v1445_v46 = vld [vmem:[#allocation8 + $0x210] sm:$0xff] }
 0x51f   :  { %2094 = vmatprep.subr.mxu1 %v1198_v53 }
 0x520   :  { %2095 = vmatpush3.msra.mxu1 %v1198_v53  ;;  %v1444_v53 = vld [vmem:[#allocation8 + $0x208] sm:$0xff] }
 0x521   :  { %2096 = vmatprep.subr.mxu1 %v1197_v54 }
 0x522   :  { %2097 = vmatpush3.msra.mxu1 %v1197_v54  ;;  %v1443_v54 = vld [vmem:[#allocation8 + $0x200] sm:$0xff] }
 0x523   :  { %1475 = vmatprep.subr.mxu1 %v1474_v41  ;;  %v1326_v41 = vld [vmem:[#allocation11 + $0xf8] sm:$0xff] }
 0x524   :  { %2101 = vmatprep.subr.mxu0 %v1326_v41 }
 0x525   :  { %2102 = vmatpush3.msra.mxu0 %v1326_v41 }
 0x591   :  { %v1059_v55 = vpop.xlane.xlu1 %1058 }
 0x592   :  { %v1067_v56 = vmul.f32 0.03125, %v1059_v55  ;;  %v1325_v55 = vld [vmem:[#allocation11 + $0xf0] sm:$0xff] }
 0x593   :  { %v1057_v57 = vpop.xlane.xlu0 %1056  ;;  %2103 = vmatprep.subr.mxu0 %v1325_v55 }
 0x594   :  { %v1066_v58 = vmul.f32 0.03125, %v1057_v57  ;;  %v1071_v60 = vmul.f32 %v1067_v56, %v1067_v56  ;;  %v1075_v8 = vsub.f32 %v2702_v43, %v1067_v56  ;;  %2104 = vmatpush3.msra.mxu0 %v1325_v55  ;;  %v1324_v56 = vld [vmem:[#allocation11 + $0xe8] sm:$0xff]  ;;  %v1323_v57 = vld [vmem:[#allocation11 + $0xe0] sm:$0xff] }
 0x595   :  { %v1065_v59 = vpop.xlane.xlu1 %1064  ;;  %2105 = vmatprep.subr.mxu0 %v1324_v56 }
 0x596   :  { %v1069_v24 = vmul.f32 0.03125, %v1065_v59  ;;  %v1070_v63 = vmul.f32 %v1066_v58, %v1066_v58  ;;  %v1074_v10 = vsub.f32 %v2705_v21, %v1066_v58  ;;  %2106 = vmatpush3.msra.mxu0 %v1324_v56  ;;  %v1322_v58 = vld [vmem:[#allocation11 + $0xd8] sm:$0xff] }
 0x597   :  { %v1063_v52 = vpop.xlane.xlu0 %1062  ;;  %2107 = vmatprep.subr.mxu0 %v1323_v57  ;;  %v1318_v59 = vld [vmem:[#allocation11 + $0xb8] sm:$0xff] }
 0x598   :  { %v1073_v0 = vsub.f32 %v1069_v24, %v1071_v60  ;;  %v1068_v1 = vmul.f32 0.03125, %v1063_v52  ;;  %2108 = vmatpush3.msra.mxu0 %v1323_v57  ;;  %v1317_v60 = vld [vmem:[#allocation11 + $0xb0] sm:$0xff]  ;;  %v1316_v24 = vld [vmem:[#allocation11 + $0xa8] sm:$0xff]  ;;  %v1315_v52 = vld [vmem:[#allocation11 + $0xa0] sm:$0xff] }
 0x599   :  { %2109 = vmatprep.subr.mxu0 %v1322_v58 }
 0x59a   :  { %v1077_v2 = vadd.f32 1e-05, %v1073_v0  ;;  %v1072_v3 = vsub.f32 %v1068_v1, %v1070_v63  ;;  %2110 = vmatpush3.msra.mxu0 %v1322_v58  ;;  %v1314_v63 = vld [vmem:[#allocation11 + $0x98] sm:$0xff]  ;;  %v1313_v0 = vld [vmem:[#allocation11 + $0x90] sm:$0xff]  ;;  %v1312_v1 = vld [vmem:[#allocation11 + $0x88] sm:$0xff] }
 0x59c   :  { %2268 = vrsqrt.f32 %v1077_v2  ;;  %v1076_v4 = vadd.f32 1e-05, %v1072_v3  ;;  %v1311_v2 = vld [vmem:[#allocation11 + $0x80] sm:$0xff]  ;;  %v1824_v3 = vld [vmem:[%s2768_s9 + $0x1] ss:$0 sm:$0xff] }
 0x59e   :  { %2270 = vrsqrt.f32 %v1076_v4 }
 0x5a9   :  { %v2269_v7 = vpop.eup %2268 }
 0x5aa   :  { %v1081_v13 = vmul.f32 %v2269_v7, %v1075_v8 }
 0x5ab   :  { %v2271_v11 = vpop.eup %2270 }
 0x5ac   :  { %v1080_v15 = vmul.f32 %v2271_v11, %v1074_v10  ;;  %v1195_v19 = vmul.f32 %v1193_v16, %v1081_v13 }
 0x5ae   :  { %v1194_v18 = vmul.f32 %v1192_v14, %v1080_v15 }
 0x5b0   :  { %2098 = vmatprep.mubr.f32.mxu1 %v1194_v18 }
 0x5b1   :  { %2099 = vmatmul.mubr.f32.vlgmr.msra.gmra.mxu1 %v1195_v19 }
 0x5b2   :  { %1476 = vmatpush1.msra.mxu1 %v1473_v22  ;;  %1539 = vmatprep.mubr.f32.mxu1 %v2460_v61 }
 0x5b3   :  { %1477 = vmatprep.subr.mxu1 %v1472_v23  ;;  %v1572_v23 = vld [vmem:[#allocation10 + $0x178] sm:$0xff] }
 0x5b4   :  { %1478 = vmatpush1.msra.mxu1 %v1471_v25  ;;  %v1189_v25 = vpop.f32.mrf.mxu0 }
 0x5b5   :  { %1479 = vmatprep.subr.mxu1 %v1470_v27  ;;  %v1828_v27 = vld [vmem:[%s2770_s11 + $0x1] ss:$0 sm:$0xff] }
 0x5b6   :  { %1480 = vmatpush1.msra.mxu1 %v1469_v31 }
 0x5b7   :  { %1481 = vmatprep.subr.mxu1 %v1468_v32  ;;  %v1411_v32 = vadd.f32 1.0, %v1189_v25  ;;  %v1678_v25 = vld [vmem:[#allocation11 + $0x138] sm:$0xff] }
 0x5b8   :  { %1482 = vmatpush1.msra.mxu1 %v1467_v33 }
 0x5b9   :  { %1483 = vmatprep.subr.mxu1 %v1466_v34 }
 0x5ba   :  { %1484 = vmatpush1.msra.mxu1 %v1465_v35  ;;  %v1410_v35 = vadd.f32 1.0, %v2713_v6 }
 0x5bb   :  { %1485 = vmatprep.subr.mxu1 %v1464_v36 }
 0x5bc   :  { %1486 = vmatpush1.msra.mxu1 %v1463_v38 }
 0x5bd   :  { %1487 = vmatprep.subr.mxu1 %v1462_v39 }
 0x5be   :  { %1488 = vmatpush1.msra.mxu1 %v1461_v40 }
 0x5bf   :  { %1489 = vmatprep.subr.mxu1 %v1460_v44 }
 0x5c0   :  { %1490 = vmatpush1.msra.mxu1 %v1459_v45 }
 0x5c1   :  { %1491 = vmatprep.subr.mxu1 %v1458_v12  ;;  %v1571_v12 = vld [vmem:[#allocation10 + $0x170] sm:$0xff] }
 0x5c2   :  { %1492 = vmatpush1.msra.mxu1 %v1457_v28  ;;  %v1568_v28 = vld [vmem:[#allocation10 + $0x158] sm:$0xff] }
 0x5c3   :  { %1493 = vmatprep.subr.mxu1 %v1456_v62  ;;  %v1567_v62 = vld [vmem:[#allocation10 + $0x150] sm:$0xff] }
 0x5c4   :  { %1494 = vmatpush1.msra.mxu1 %v1455_v30  ;;  %v1566_v30 = vld [vmem:[#allocation10 + $0x148] sm:$0xff] }
 0x5c5   :  { %1495 = vmatprep.subr.mxu1 %v1454_v29  ;;  %v1565_v29 = vld [vmem:[#allocation10 + $0x140] sm:$0xff] }
 0x5c6   :  { %1496 = vmatpush1.msra.mxu1 %v1453_v26  ;;  %v1564_v26 = vld [vmem:[#allocation10 + $0x138] sm:$0xff] }
 0x5c7   :  { %1497 = vmatprep.subr.mxu1 %v1452_v17  ;;  %v1563_v17 = vld [vmem:[#allocation10 + $0x130] sm:$0xff] }
 0x5c8   :  { %1498 = vmatpush1.msra.mxu1 %v1451_v47  ;;  %v1562_v47 = vld [vmem:[#allocation10 + $0x128] sm:$0xff] }
 0x5c9   :  { %1499 = vmatprep.subr.mxu1 %v1450_v20  ;;  %v1561_v20 = vld [vmem:[#allocation10 + $0x120] sm:$0xff] }
 0x5ca   :  { %1500 = vmatpush1.msra.mxu1 %v1449_v48  ;;  %v1560_v48 = vld [vmem:[#allocation10 + $0x118] sm:$0xff] }
 0x5cb   :  { %1501 = vmatprep.subr.mxu1 %v1448_v49  ;;  %v1559_v49 = vld [vmem:[#allocation10 + $0x110] sm:$0xff] }
 0x5cc   :  { %1502 = vmatpush1.msra.mxu1 %v1447_v42  ;;  %v1558_v42 = vld [vmem:[#allocation10 + $0x108] sm:$0xff] }
 0x5cd   :  { %1503 = vmatprep.subr.mxu1 %v1446_v51  ;;  %v1557_v51 = vld [vmem:[#allocation10 + $0x100] sm:$0xff] }
 0x5ce   :  { %1504 = vmatpush1.msra.mxu1 %v1445_v46 }
 0x5cf   :  { %1505 = vmatprep.subr.mxu1 %v1444_v53 }
 0x5d0   :  { %1506 = vmatpush1.msra.mxu1 %v1443_v54 }
 0x5d1   :  { %1540 = vmatmul.mubr.f32.vlgmr.msra.gmra.mxu1 %v2679_v37  ;;  %v1321_v37 = vld [vmem:[#allocation11 + $0xd0] sm:$0xff] }
 0x5d2   :  { %1545 = vmatprep.mubr.f32.mxu1 %v2460_v61  ;;  %2111 = vmatprep.subr.mxu0 %v1321_v37  ;;  %v1320_v61 = vld [vmem:[#allocation11 + $0xc8] sm:$0xff] }
 0x5d3   :  { %2112 = vmatpush3.msra.mxu0 %v1321_v37 }
 0x5d4   :  { %2113 = vmatprep.subr.mxu0 %v1320_v61 }
 0x5d5   :  { %1546 = vmatmul.mubr.f32.gmra.mxu1 %v2683_v50  ;;  %2114 = vmatpush3.msra.mxu0 %v1320_v61  ;;  %v1319_v50 = vld [vmem:[#allocation11 + $0xc0] sm:$0xff] }
 0x5d6   :  { %2115 = vmatprep.subr.mxu0 %v1319_v50 }
 0x5d7   :  { %2116 = vmatpush3.msra.mxu0 %v1319_v50 }
 0x5d8   :  { %2117 = vmatprep.subr.mxu0 %v1318_v59 }
 0x5d9   :  { %2118 = vmatpush3.msra.mxu0 %v1318_v59 }
 0x5da   :  { %2119 = vmatprep.subr.mxu0 %v1317_v60 }
 0x5db   :  { %2120 = vmatpush3.msra.mxu0 %v1317_v60 }
 0x5dc   :  { %2121 = vmatprep.subr.mxu0 %v1316_v24 }
 0x5dd   :  { %2122 = vmatpush3.msra.mxu0 %v1316_v24 }
 0x5de   :  { %2123 = vmatprep.subr.mxu0 %v1315_v52 }
 0x5df   :  { %2124 = vmatpush3.msra.mxu0 %v1315_v52 }
 0x5e0   :  { %2125 = vmatprep.subr.mxu0 %v1314_v63 }
 0x5e1   :  { %2126 = vmatpush3.msra.mxu0 %v1314_v63 }
 0x5e2   :  { %2127 = vmatprep.subr.mxu0 %v1313_v0 }
 0x5e3   :  { %2128 = vmatpush3.msra.mxu0 %v1313_v0 }
 0x5e4   :  { %2129 = vmatprep.subr.mxu0 %v1312_v1 }
 0x5e5   :  { %2130 = vmatpush3.msra.mxu0 %v1312_v1 }
 0x5e6   :  { %2131 = vmatprep.subr.mxu0 %v1311_v2 }
 0x5e7   :  { %2132 = vmatpush3.msra.mxu0 %v1311_v2 }
 0x5e8   :  { %2136 = vmatprep.subr.mxu0 %v1572_v23 }
 0x671   :  { %v2100_v4 = vpop.f32.mrf.mxu1 }
 0x672   :  { %v1293_v5 = vadd.f32 %v2100_v4, %v1824_v3 }
 0x673   :  { %v1287_v7 = vpop.f32.mrf.mxu1 }
 0x674   :  { %v1826_v8 = vmul.f32 -1.442695, %v1293_v5  ;;  %v1288_v9 = vadd.f32 %v1824_v3, %v1287_v7 }
 0x676   :  { %2272 = vpow2.f32 %v1826_v8  ;;  %v1825_v10 = vmul.f32 -1.442695, %v1288_v9 }
 0x678   :  { %2274 = vpow2.f32 %v1825_v10 }
 0x683   :  { %v2273_v11 = vpop.eup %2272 }
 0x684   :  { %v1303_v13 = vadd.f32 1.0, %v2273_v11 }
 0x685   :  { %v2275_v14 = vpop.eup %2274 }
 0x686   :  { %v1302_v15 = vadd.f32 1.0, %v2275_v14  ;;  %2276 = vrcp.f32 %v1303_v13  ;;  %v1686_v13 = vld [vmem:[#allocation11 + $0x178] sm:$0xff]  ;;  %v1685_v14 = vld [vmem:[#allocation11 + $0x170] sm:$0xff] }
 0x687   :  { %2171 = vmatprep.subr.mxu1 %v1686_v13 }
 0x688   :  { %2278 = vrcp.f32 %v1302_v15  ;;  %2172 = vmatpush3.msra.mxu1 %v1686_v13  ;;  %v1684_v15 = vld [vmem:[#allocation11 + $0x168] sm:$0xff] }
 0x689   :  { %2173 = vmatprep.subr.mxu1 %v1685_v14 }
 0x68a   :  { %2174 = vmatpush3.msra.mxu1 %v1685_v14 }
 0x68b   :  { %2175 = vmatprep.subr.mxu1 %v1684_v15 }
 0x68c   :  { %2176 = vmatpush3.msra.mxu1 %v1684_v15 }
 0x691   :  { %v1541_v52 = vpop.f32.mrf.mxu1 }
 0x692   :  { %v1552_v7 = vadd.f32 1.0, %v1541_v52 }
 0x693   :  { %v2277_v16 = vpop.eup %2276  ;;  %v2740_v63 = vpop.f32.mrf.mxu1 }
 0x694   :  { %v1309_v22 = vmul.f32 %v2277_v16, %v1293_v5  ;;  %v1683_v16 = vld [vmem:[#allocation11 + $0x160] sm:$0xff] }
 0x695   :  { %v2279_v18 = vpop.eup %2278  ;;  %v1547_v2 = vpop.f32.mrf.mxu1  ;;  %2177 = vmatprep.subr.mxu1 %v1683_v16 }
 0x696   :  { %v1308_v19 = vmul.f32 %v2279_v18, %v1288_v9  ;;  %v1553_v9 = vadd.f32 1.0, %v1547_v2  ;;  %2178 = vmatpush3.msra.mxu1 %v1683_v16  ;;  %v1682_v18 = vld [vmem:[#allocation11 + $0x158] sm:$0xff] }
 0x697   :  { %2179 = vmatprep.subr.mxu1 %v1682_v18 }
 0x698   :  { %2133 = vmatprep.mubr.f32.mxu0 %v1308_v19  ;;  %2180 = vmatpush3.msra.mxu1 %v1682_v18  ;;  %v1681_v19 = vld [vmem:[#allocation11 + $0x150] sm:$0xff] }
 0x699   :  { %2134 = vmatmul.mubr.f32.vlgmr.msra.gmra.mxu0 %v1309_v22  ;;  %2181 = vmatprep.subr.mxu1 %v1681_v19  ;;  %v1680_v22 = vld [vmem:[#allocation11 + $0x148] sm:$0xff] }
 0x69a   :  { %2137 = vmatpush3.msra.mxu0 %v1572_v23  ;;  %2182 = vmatpush3.msra.mxu1 %v1681_v19  ;;  %v1679_v23 = vld [vmem:[#allocation11 + $0x140] sm:$0xff] }
 0x69b   :  { %2138 = vmatprep.subr.mxu0 %v1571_v12  ;;  %2183 = vmatprep.subr.mxu1 %v1680_v22 }
 0x69c   :  { %2139 = vmatpush3.msra.mxu0 %v1571_v12  ;;  %2184 = vmatpush3.msra.mxu1 %v1680_v22 }
 0x69d   :  { %2185 = vmatprep.subr.mxu1 %v1679_v23 }
 0x69e   :  { %2186 = vmatpush3.msra.mxu1 %v1679_v23 }
 0x69f   :  { %2187 = vmatprep.subr.mxu1 %v1678_v25 }
 0x6a0   :  { %2188 = vmatpush3.msra.mxu1 %v1678_v25 }
 0x759   :  { %v2135_v31 = vpop.f32.mrf.mxu0 }
 0x75a   :  { %v1407_v33 = vadd.f32 %v2135_v31, %v1828_v27  ;;  %v1676_v31 = vld [vmem:[#allocation11 + $0x128] sm:$0xff] }
 0x75b   :  { %v1401_v34 = vpop.f32.mrf.mxu0 }
 0x75c   :  { %v1413_v36 = vmul.f32 %v1411_v32, %v1407_v33  ;;  %v1402_v38 = vadd.f32 %v1828_v27, %v1401_v34  ;;  %v1677_v27 = vld [vmem:[#allocation11 + $0x130] sm:$0xff]  ;;  %v1675_v32 = vld [vmem:[#allocation11 + $0x120] sm:$0xff]  ;;  %v1674_v33 = vld [vmem:[#allocation11 + $0x118] sm:$0xff] }
 0x75d   :  { %2189 = vmatprep.subr.mxu1 %v1677_v27  ;;  %v1673_v34 = vld [vmem:[#allocation11 + $0x110] sm:$0xff] }
 0x75e   :  { %v2729_v39 = vadd.f32 %v1413_v36, %v2702_v43  ;;  %v1412_v40 = vmul.f32 %v1410_v35, %v1402_v38  ;;  %v1570_v43 = vld [vmem:[#allocation10 + $0x168] sm:$0xff]  ;;  %2190 = vmatpush3.msra.mxu1 %v1677_v27  ;;  %v1671_v36 = vld [vmem:[#allocation11 + $0x100] sm:$0xff]  ;;  %v1830_v38 = vld [vmem:[%s2768_s9 + $0x2] ss:$0 sm:$0xff] }
 0x75f   :  { %2140 = vmatprep.subr.mxu0 %v1570_v43  ;;  %2191 = vmatprep.subr.mxu1 %v1676_v31  ;;  %v1672_v35 = vld [vmem:[#allocation11 + $0x108] sm:$0xff] }
 0x760   :  { %v2732_v44 = vadd.f32 %v1412_v40, %v2705_v21  ;;  %1418 = vadd.xlane.f32.xlu1 %v2729_v39  ;;  %v1421_v45 = vmul.f32 %v2729_v39, %v2729_v39  ;;  %2141 = vmatpush3.msra.mxu0 %v1570_v43  ;;  %v1569_v21 = vld [vmem:[#allocation10 + $0x160] sm:$0xff] }
 0x761   :  { %2142 = vmatprep.subr.mxu0 %v1569_v21  ;;  %2192 = vmatpush3.msra.mxu1 %v1676_v31 }
 0x762   :  { %1416 = vadd.xlane.f32.xlu0 %v2732_v44  ;;  %v1420_v6 = vmul.f32 %v2732_v44, %v2732_v44  ;;  %2143 = vmatpush3.msra.mxu0 %v1569_v21 }
 0x763   :  { %2144 = vmatprep.subr.mxu0 %v1568_v28  ;;  %2193 = vmatprep.subr.mxu1 %v1675_v32 }
 0x764   :  { %1424 = vadd.xlane.f32.xlu1 %v1421_v45  ;;  %2145 = vmatpush3.msra.mxu0 %v1568_v28 }
 0x765   :  { %2146 = vmatprep.subr.mxu0 %v1567_v62  ;;  %2194 = vmatpush3.msra.mxu1 %v1675_v32 }
 0x766   :  { %1422 = vadd.xlane.f32.xlu0 %v1420_v6  ;;  %2147 = vmatpush3.msra.mxu0 %v1567_v62 }
 0x767   :  { %2148 = vmatprep.subr.mxu0 %v1566_v30  ;;  %2195 = vmatprep.subr.mxu1 %v1674_v33 }
 0x768   :  { %2149 = vmatpush3.msra.mxu0 %v1566_v30  ;;  %2196 = vmatpush3.msra.mxu1 %v1674_v33 }
 0x769   :  { %2150 = vmatprep.subr.mxu0 %v1565_v29  ;;  %2197 = vmatprep.subr.mxu1 %v1673_v34 }
 0x76a   :  { %2151 = vmatpush3.msra.mxu0 %v1565_v29  ;;  %2198 = vmatpush3.msra.mxu1 %v1673_v34 }
 0x76b   :  { %2152 = vmatprep.subr.mxu0 %v1564_v26  ;;  %2199 = vmatprep.subr.mxu1 %v1672_v35 }
 0x76c   :  { %2153 = vmatpush3.msra.mxu0 %v1564_v26  ;;  %2200 = vmatpush3.msra.mxu1 %v1672_v35 }
 0x76d   :  { %2154 = vmatprep.subr.mxu0 %v1563_v17  ;;  %2201 = vmatprep.subr.mxu1 %v1671_v36 }
 0x76e   :  { %2155 = vmatpush3.msra.mxu0 %v1563_v17  ;;  %2202 = vmatpush3.msra.mxu1 %v1671_v36 }
 0x76f   :  { %2156 = vmatprep.subr.mxu0 %v1562_v47 }
 0x770   :  { %2157 = vmatpush3.msra.mxu0 %v1562_v47 }
 0x771   :  { %2158 = vmatprep.subr.mxu0 %v1561_v20 }
 0x772   :  { %2159 = vmatpush3.msra.mxu0 %v1561_v20 }
 0x773   :  { %2160 = vmatprep.subr.mxu0 %v1560_v48 }
 0x774   :  { %2161 = vmatpush3.msra.mxu0 %v1560_v48  ;;  %v1549_v48 = vpop.f32.mrf.mxu1 }
 0x775   :  { %2162 = vmatprep.subr.mxu0 %v1559_v49 }
 0x776   :  { %2163 = vmatpush3.msra.mxu0 %v1559_v49  ;;  %v1834_v49 = vld [vmem:[%s2770_s11 + $0x2] ss:$0 sm:$0xff] }
 0x777   :  { %2164 = vmatprep.subr.mxu0 %v1558_v42 }
 0x778   :  { %2165 = vmatpush3.msra.mxu0 %v1558_v42 }
 0x779   :  { %2166 = vmatprep.subr.mxu0 %v1557_v51 }
 0x77a   :  { %2167 = vmatpush3.msra.mxu0 %v1557_v51  ;;  %v1771_v51 = vadd.f32 1.0, %v1549_v48 }
 0x7e9   :  { %v1419_v46 = vpop.xlane.xlu1 %1418 }
 0x7ea   :  { %v1427_v53 = vmul.f32 0.03125, %v1419_v46 }
 0x7eb   :  { %v1417_v54 = vpop.xlane.xlu0 %1416 }
 0x7ec   :  { %v1426_v41 = vmul.f32 0.03125, %v1417_v54  ;;  %v1431_v56 = vmul.f32 %v1427_v53, %v1427_v53  ;;  %v1435_v1 = vsub.f32 %v2729_v39, %v1427_v53  ;;  %v1770_v54 = vadd.f32 1.0, %v2740_v63 }
 0x7ed   :  { %v1425_v55 = vpop.xlane.xlu1 %1424 }
 0x7ee   :  { %v1429_v57 = vmul.f32 0.03125, %v1425_v55  ;;  %v1430_v37 = vmul.f32 %v1426_v41, %v1426_v41  ;;  %v1434_v3 = vsub.f32 %v2732_v44, %v1426_v41 }
 0x7ef   :  { %v1423_v58 = vpop.xlane.xlu0 %1422 }
 0x7f0   :  { %v1433_v61 = vsub.f32 %v1429_v57, %v1431_v56  ;;  %v1428_v50 = vmul.f32 0.03125, %v1423_v58 }
 0x7f2   :  { %v1437_v59 = vadd.f32 1e-05, %v1433_v61  ;;  %v1432_v60 = vsub.f32 %v1428_v50, %v1430_v37 }
 0x7f4   :  { %2280 = vrsqrt.f32 %v1437_v59  ;;  %v1436_v24 = vadd.f32 1e-05, %v1432_v60 }
 0x7f6   :  { %2282 = vrsqrt.f32 %v1436_v24 }
 0x801   :  { %v2281_v0 = vpop.eup %2280 }
 0x802   :  { %v1441_v5 = vmul.f32 %v2281_v0, %v1435_v1 }
 0x803   :  { %v2283_v4 = vpop.eup %2282 }
 0x804   :  { %v1440_v8 = vmul.f32 %v2283_v4, %v1434_v3  ;;  %v1555_v11 = vmul.f32 %v1553_v9, %v1441_v5 }
 0x806   :  { %v1554_v10 = vmul.f32 %v1552_v7, %v1440_v8 }
 0x808   :  { %2168 = vmatprep.mubr.f32.mxu0 %v1554_v10 }
 0x809   :  { %2169 = vmatmul.mubr.f32.vlgmr.msra.gmra.mxu0 %v1555_v11 }
 0x8c9   :  { %v2170_v40 = vpop.f32.mrf.mxu0 }
 0x8ca   :  { %v1653_v45 = vadd.f32 %v2170_v40, %v1830_v38 }
 0x8cb   :  { %v1647_v6 = vpop.f32.mrf.mxu0 }
 0x8cc   :  { %v1832_v12 = vmul.f32 -1.442695, %v1653_v45  ;;  %v1648_v43 = vadd.f32 %v1830_v38, %v1647_v6 }
 0x8ce   :  { %2284 = vpow2.f32 %v1832_v12  ;;  %v1831_v21 = vmul.f32 -1.442695, %v1648_v43 }
 0x8d0   :  { %2286 = vpow2.f32 %v1831_v21 }
 0x8db   :  { %v2285_v28 = vpop.eup %2284 }
 0x8dc   :  { %v1663_v62 = vadd.f32 1.0, %v2285_v28 }
 0x8dd   :  { %v2287_v30 = vpop.eup %2286 }
 0x8de   :  { %v1662_v29 = vadd.f32 1.0, %v2287_v30  ;;  %2288 = vrcp.f32 %v1663_v62 }
 0x8e0   :  { %2290 = vrcp.f32 %v1662_v29 }
 0x8eb   :  { %v2289_v26 = vpop.eup %2288 }
 0x8ec   :  { %v1669_v20 = vmul.f32 %v2289_v26, %v1653_v45 }
 0x8ed   :  { %v2291_v17 = vpop.eup %2290 }
 0x8ee   :  { %v1668_v47 = vmul.f32 %v2291_v17, %v1648_v43 }
 0x8f0   :  { %2203 = vmatprep.mubr.f32.mxu1 %v1668_v47 }
 0x8f1   :  { %2204 = vmatmul.mubr.f32.vlgmr.msra.gmra.mxu1 %v1669_v20 }
 0x9b1   :  { %v2205_v42 = vpop.f32.mrf.mxu1 }
 0x9b2   :  { %v1767_v46 = vadd.f32 %v2205_v42, %v1834_v49 }
 0x9b3   :  { %v1761_v53 = vpop.f32.mrf.mxu1 }
 0x9b4   :  { %v1773_v41 = vmul.f32 %v1771_v51, %v1767_v46  ;;  %v1762_v55 = vadd.f32 %v1834_v49, %v1761_v53 }
 0x9b6   :  { %v1775_v56 = vadd.f32 %v1773_v41, %v2729_v39  ;;  %v1772_v57 = vmul.f32 %v1770_v54, %v1762_v55 }
 0x9b8   :  { %1777 = vst [vmem:[#allocation13 + $0x8] sm:$0xff] %v1775_v56  ;;  %v1774_v58 = vadd.f32 %v1772_v57, %v2732_v44 }
 0x9ba   :  { %1776 = vst [vmem:[#allocation13] sm:$0xff] %v1774_v58 }
 0x9bb   :  { %2423 = shalt.err (!%p2420_p6)
}
 0x9bc   :  { %1789 = dma.vmem_to_hbm [thread:$0]  %s1784_s15, 256, %s2771_s12, [#allocation4], %s2447_s3, %s2447_s3, %s2448_s19  }
 0x9bd   :  { %2440 = dma.done.wait [#allocation4], 256  }
 0x9be   :  { %2441 = vsyncadd [#allocation4], 4294967040 }
 0x9bf   :  { %1793 = vsyncpa [#allocation3], 1 }
 0x9c0   :  { %1794 = vsyncpa [#allocation6], 1 }
 0x9c1   :  { %1795 = vsyncpa [#allocation9], 1 }
 0x9c2   :  { %1796 = vsyncpa [#allocation12], 1 }
 0x9c3   :  { %1797 = vsyncpa [#allocation4], 1 }

</bundles_post_ra>
